<compile_context>
chip_gen: v6e
topology: v6e:2x2x1
jax: 0.10.0
libtpu: 0.0.40
codegen_flags: <defaults>
</compile_context>

<pallas_src>
import math

import jax
import jax.numpy as jnp
from jax.experimental import pallas as pl
from jax.experimental.pallas import tpu as pltpu


# ----------------------------- small helpers --------------------------------
def _h_sigmoid(x):
    # ReLU6(x + 3) / 6
    return jnp.clip(x + 3.0, 0.0, 6.0) * (1.0 / 6.0)


def _h_swish(x):
    return x * _h_sigmoid(x)


def _make_shift_mats(P):
    """(9, P*P, P*P) 0/1 matrices so that S_k @ a == zero-padded spatial shift of a."""
    PP = P * P
    r = jnp.arange(PP)
    i, j = r // P, r % P
    cols = jnp.arange(PP)[None, :]
    mats = []
    for ky in range(3):
        for kx in range(3):
            dy, dx = ky - 1, kx - 1
            si, sj = i + dy, j + dx
            valid = (si >= 0) & (si < P) & (sj >= 0) & (sj < P)
            src = si * P + sj
            mat = (cols == src[:, None]) & valid[:, None]
            mats.append(mat.astype(jnp.float32))
    return jnp.stack(mats, axis=0)


# ------------------------- kernel 1: LN + MHA + residual ---------------------
def _attn_block_kernel(x_ref, g_ref, b_ref, wq_ref, wk_ref, wv_ref, wo_ref,
                       bo_ref, o_ref):
    x = x_ref[0]                                           # (N, C) residual stream
    num_heads = wq_ref.shape[0]
    head_dim = wq_ref.shape[2]
    scale = float(head_dim) ** -0.5

    # LayerNorm (eps=1e-6, biased variance), torch semantics.
    mu = jnp.mean(x, axis=-1, keepdims=True)
    xc = x - mu
    var = jnp.mean(xc * xc, axis=-1, keepdims=True)
    xn = xc * jax.lax.rsqrt(var + 1e-6) * g_ref[...] + b_ref[...]

    # residual + proj bias; each head accumulates its projected output directly
    # (mathematically identical to concat-heads -> proj).
    acc = x + bo_ref[...]                                  # (N, C)
    for h in range(num_heads):
        q = jnp.dot(xn, wq_ref[h], preferred_element_type=jnp.float32) * scale
        k = jnp.dot(xn, wk_ref[h], preferred_element_type=jnp.float32)
        v = jnp.dot(xn, wv_ref[h], preferred_element_type=jnp.float32)
        s = jax.lax.dot_general(q, k, (((1,), (1,)), ((), ())),
                                preferred_element_type=jnp.float32)   # (N, N)
        s = s - jnp.max(s, axis=-1, keepdims=True)
        p = jnp.exp(s)
        inv = pl.reciprocal(jnp.sum(p, axis=-1, keepdims=True), approx=False)
        p = p * inv
        oh = jnp.dot(p, v, preferred_element_type=jnp.float32)        # (N, D)
        acc = acc + jnp.dot(oh, wo_ref[h], preferred_element_type=jnp.float32)
    # attn_drop / proj_drop have ratio 0.0 -> identity.
    o_ref[0] = acc.astype(o_ref.dtype)


# ---------------- kernel 2: LocalityFeedForward('hs+se') + residual ----------
def _locality_ffn_kernel(x_ref, shift_ref, w1_ref, b1_ref, wdw_ref, b2_ref,
                         wse1_ref, bse1_ref, wse2_ref, bse2_ref,
                         w3_ref, b3_ref, o_ref):
    x = x_ref[0]                                           # (PP, C) spatial tokens

    # 1x1 conv (BN1 folded) + h_swish.
    a = jnp.dot(x, w1_ref[...], preferred_element_type=jnp.float32) + b1_ref[...]
    a = _h_swish(a)                                        # (PP, HID)

    # Depthwise 3x3 conv (padding=1) as 9 shift-matrix matmuls (BN2 folded).
    acc = jnp.zeros(a.shape, jnp.float32)
    for tap in range(shift_ref.shape[0]):
        shifted = jnp.dot(shift_ref[tap], a, preferred_element_type=jnp.float32)
        acc = acc + shifted * wdw_ref[tap]                 # wdw_ref[tap]: (1, HID)
    a2 = _h_swish(acc + b2_ref[...])                       # (PP, HID)

    # Squeeze-and-Excite: global average pool -> FC -> ReLU -> FC -> h_sigmoid.
    pooled = jnp.mean(a2, axis=0, keepdims=True)           # (1, HID)
    se = jnp.dot(pooled, wse1_ref[...], preferred_element_type=jnp.float32) + bse1_ref[...]
    se = jnp.maximum(se, 0.0)
    se = jnp.dot(se, wse2_ref[...], preferred_element_type=jnp.float32) + bse2_ref[...]
    se = _h_sigmoid(se)                                    # (1, HID)
    a3 = a2 * se

    # 1x1 conv (BN3 folded) + residual; single full-tile lane-dense store.
    out = jnp.dot(a3, w3_ref[...], preferred_element_type=jnp.float32) + b3_ref[...]
    o_ref[0] = (out + x).astype(o_ref.dtype)


# --------------------------------- wrapper -----------------------------------
def block_with_cnn_forward(x, params, num_heads):
    """x: (B, N, C) with N = 1 + P*P tokens (cls + patches). Returns (B, N, C)."""
    B, N, C = x.shape
    P = int(round(math.sqrt(N - 1)))
    assert P * P + 1 == N and C % num_heads == 0
    PP = P * P
    D = C // num_heads
    HID = params["w1"].shape[1]
    HIDR = params["w_se1"].shape[1]
    eps_bn = 1e-5

    # ---- hoisted, sample-invariant parameter preparation (runs once) ----
    ln_g = params["ln_g"].reshape(1, C)
    ln_b = params["ln_b"].reshape(1, C)
    wqkv = params["w_qkv"].reshape(C, 3, num_heads, D)
    wq = jnp.transpose(wqkv[:, 0], (1, 0, 2))              # (H, C, D)
    wk = jnp.transpose(wqkv[:, 1], (1, 0, 2))
    wv = jnp.transpose(wqkv[:, 2], (1, 0, 2))
    wo = params["w_proj"].reshape(num_heads, D, C)         # (H, D, C)
    bo = params["b_proj"].reshape(1, C)

    s1 = params["bn1_g"] / jnp.sqrt(params["bn1_rv"] + eps_bn)
    w1f = params["w1"] * s1[None, :]
    b1f = (params["bn1_b"] - params["bn1_rm"] * s1).reshape(1, HID)
    s2 = params["bn2_g"] / jnp.sqrt(params["bn2_rv"] + eps_bn)
    wdwf = (params["w_dw"] * s2[None, None, :]).reshape(9, 1, HID)
    b2f = (params["bn2_b"] - params["bn2_rm"] * s2).reshape(1, HID)
    s3 = params["bn3_g"] / jnp.sqrt(params["bn3_rv"] + eps_bn)
    w3f = params["w3"] * s3[None, :]
    b3f = (params["bn3_b"] - params["bn3_rm"] * s3).reshape(1, C)
    wse1 = params["w_se1"]
    bse1 = params["b_se1"].reshape(1, HIDR)
    wse2 = params["w_se2"]
    bse2 = params["b_se2"].reshape(1, HID)
    shift = _make_shift_mats(P)                            # (9, PP, PP)

    # ---- kernel 1: LayerNorm + MHA + residual, grid over batch ----
    y = pl.pallas_call(
        _attn_block_kernel,
        out_shape=jax.ShapeDtypeStruct((B, N, C), x.dtype),
        grid_spec=pltpu.PrefetchScalarGridSpec(
            num_scalar_prefetch=0,
            grid=(B,),
            in_specs=[
                pl.BlockSpec((1, N, C), lambda b: (b, 0, 0)),
                pl.BlockSpec((1, C), lambda b: (0, 0)),
                pl.BlockSpec((1, C), lambda b: (0, 0)),
                pl.BlockSpec((num_heads, C, D), lambda b: (0, 0, 0)),
                pl.BlockSpec((num_heads, C, D), lambda b: (0, 0, 0)),
                pl.BlockSpec((num_heads, C, D), lambda b: (0, 0, 0)),
                pl.BlockSpec((num_heads, D, C), lambda b: (0, 0, 0)),
                pl.BlockSpec((1, C), lambda b: (0, 0)),
            ],
            out_specs=pl.BlockSpec((1, N, C), lambda b: (b, 0, 0)),
        ),
        compiler_params=pltpu.CompilerParams(
            dimension_semantics=("parallel",)),
    )(x, ln_g, ln_b, wq, wk, wv, wo, bo)

    # ---- token plumbing (free slices in the wrapper) ----
    cls_tok = y[:, :1, :]                                  # (B, 1, C)
    xs = y[:, 1:, :]                                       # (B, PP, C) row-major spatial map

    # ---- kernel 2: LocalityFeedForward('hs+se') + residual, grid over batch ----
    z = pl.pallas_call(
        _locality_ffn_kernel,
        out_shape=jax.ShapeDtypeStruct((B, PP, C), x.dtype),
        grid_spec=pltpu.PrefetchScalarGridSpec(
            num_scalar_prefetch=0,
            grid=(B,),
            in_specs=[
                pl.BlockSpec((1, PP, C), lambda b: (b, 0, 0)),
                pl.BlockSpec((9, PP, PP), lambda b: (0, 0, 0)),
                pl.BlockSpec((C, HID), lambda b: (0, 0)),
                pl.BlockSpec((1, HID), lambda b: (0, 0)),
                pl.BlockSpec((9, 1, HID), lambda b: (0, 0, 0)),
                pl.BlockSpec((1, HID), lambda b: (0, 0)),
                pl.BlockSpec((HID, HIDR), lambda b: (0, 0)),
                pl.BlockSpec((1, HIDR), lambda b: (0, 0)),
                pl.BlockSpec((HIDR, HID), lambda b: (0, 0)),
                pl.BlockSpec((1, HID), lambda b: (0, 0)),
                pl.BlockSpec((HID, C), lambda b: (0, 0)),
                pl.BlockSpec((1, C), lambda b: (0, 0)),
            ],
            out_specs=pl.BlockSpec((1, PP, C), lambda b: (b, 0, 0)),
        ),
        compiler_params=pltpu.CompilerParams(
            dimension_semantics=("parallel",)),
    )(xs, shift, w1f, b1f, wdwf, b2f, wse1, bse1, wse2, bse2, w3f, b3f)

    return jnp.concatenate([cls_tok, z], axis=1)


# --------------------------- pure-JAX reference ------------------------------
def block_with_cnn_reference(x, params, num_heads):
    B, N, C = x.shape
    P = int(round(math.sqrt(N - 1)))
    D = C // num_heads
    scale = D ** -0.5
    eps_bn = 1e-5

    # LayerNorm + attention + residual.
    mu = jnp.mean(x, axis=-1, keepdims=True)
    var = jnp.mean((x - mu) ** 2, axis=-1, keepdims=True)
    xn = (x - mu) / jnp.sqrt(var + 1e-6) * params["ln_g"] + params["ln_b"]
    qkv = (xn @ params["w_qkv"]).reshape(B, N, 3, num_heads, D)
    qkv = jnp.transpose(qkv, (2, 0, 3, 1, 4))
    q, k, v = qkv[0], qkv[1], qkv[2]
    attn = jnp.einsum("bhnd,bhmd->bhnm", q, k) * scale
    attn = jax.nn.softmax(attn, axis=-1)
    o = jnp.einsum("bhnm,bhmd->bhnd", attn, v)
    o = jnp.transpose(o, (0, 2, 1, 3)).reshape(B, N, C)
    y = x + o @ params["w_proj"] + params["b_proj"]

    # LocalityFeedForward('hs+se') on spatial tokens.
    cls_tok = y[:, :1, :]
    xs = y[:, 1:, :].reshape(B, P, P, C)

    def bn(t, g, b, rm, rv):
        return (t - rm) / jnp.sqrt(rv + eps_bn) * g + b

    h1 = jnp.einsum("bijc,ch->bijh", xs, params["w1"])
    h1 = _h_swish(bn(h1, params["bn1_g"], params["bn1_b"],
                     params["bn1_rm"], params["bn1_rv"]))
    h1p = jnp.pad(h1, ((0, 0), (1, 1), (1, 1), (0, 0)))
    h2 = jnp.zeros_like(h1)
    for ky in range(3):
        for kx in range(3):
            h2 = h2 + h1p[:, ky:ky + P, kx:kx + P, :] * params["w_dw"][ky, kx]
    h2 = _h_swish(bn(h2, params["bn2_g"], params["bn2_b"],
                     params["bn2_rm"], params["bn2_rv"]))
    pooled = jnp.mean(h2, axis=(1, 2))
    se = jax.nn.relu(pooled @ params["w_se1"] + params["b_se1"])
    se = _h_sigmoid(se @ params["w_se2"] + params["b_se2"])
    h2 = h2 * se[:, None, None, :]
    h3 = jnp.einsum("bijh,hc->bijc", h2, params["w3"])
    h3 = bn(h3, params["bn3_g"], params["bn3_b"],
            params["bn3_rm"], params["bn3_rv"])
    out_sp = (h3 + xs).reshape(B, P * P, C)
    return jnp.concatenate([cls_tok, out_sp], axis=1)


# ----------------------------------- main ------------------------------------
if __name__ == "__main__":
    B, P, C, NUM_HEADS = 2, 4, 32, 4
    N = 1 + P * P            # 17 tokens (cls + 4x4 patches)
    HID = 4 * C              # LocalityFeedForward hidden dim (expand_ratio=4)
    HIDR = HID // 4          # SE reduction (reduction=4)

    key = jax.random.PRNGKey(0)
    ks = jax.random.split(key, 26)

    def nrm(k, shape, s=0.1):
        return s * jax.random.normal(k, shape, dtype=jnp.float32)

    x = jax.random.normal(ks[0], (B, N, C), dtype=jnp.float32)
    params = {
        "ln_g": 1.0 + nrm(ks[1], (C,)), "ln_b": nrm(ks[2], (C,)),
        "w_qkv": nrm(ks[3], (C, 3 * C)),
        "w_proj": nrm(ks[4], (C, C)), "b_proj": nrm(ks[5], (C,)),
        "w1": nrm(ks[6], (C, HID)),
        "bn1_g": 1.0 + nrm(ks[7], (HID,)), "bn1_b": nrm(ks[8], (HID,)),
        "bn1_rm": nrm(ks[9], (HID,)),
        "bn1_rv": 1.0 + 0.1 * jnp.abs(jax.random.normal(ks[10], (HID,), jnp.float32)),
        "w_dw": nrm(ks[11], (3, 3, HID)),
        "bn2_g": 1.0 + nrm(ks[12], (HID,)), "bn2_b": nrm(ks[13], (HID,)),
        "bn2_rm": nrm(ks[14], (HID,)),
        "bn2_rv": 1.0 + 0.1 * jnp.abs(jax.random.normal(ks[15], (HID,), jnp.float32)),
        "w_se1": nrm(ks[16], (HID, HIDR)), "b_se1": nrm(ks[17], (HIDR,)),
        "w_se2": nrm(ks[18], (HIDR, HID)), "b_se2": nrm(ks[19], (HID,)),
        "w3": nrm(ks[20], (HID, C)),
        "bn3_g": 1.0 + nrm(ks[21], (C,)), "bn3_b": nrm(ks[22], (C,)),
        "bn3_rm": nrm(ks[23], (C,)),
        "bn3_rv": 1.0 + 0.1 * jnp.abs(jax.random.normal(ks[24], (C,), jnp.float32)),
    }

    out = block_with_cnn_forward(x, params, num_heads=NUM_HEADS)
    out = jax.block_until_ready(out)
    assert out.shape == (B, N, C)

    with jax.default_matmul_precision("float32"):
        ref = block_with_cnn_reference(x, params, num_heads=NUM_HEADS)
    ref = jax.block_until_ready(ref)
    max_err = float(jnp.max(jnp.abs(out - ref)))
    assert jnp.allclose(out, ref, atol=2e-2, rtol=2e-2), (
        f"mismatch vs pure-JAX reference (max abs err = {max_err})")
    print("KERNEL_OK")
</pallas_src>

<mosaic_0001>
module attributes {stable_mosaic.version = 11 : i64} {
  func.func @_attn_block_kernel(%arg0: i32, %arg1: memref<1x17x32xf32, #tpu.memory_space<vmem>>, %arg2: memref<1x32xf32, #tpu.memory_space<vmem>>, %arg3: memref<1x32xf32, #tpu.memory_space<vmem>>, %arg4: memref<4x32x8xf32, #tpu.memory_space<vmem>>, %arg5: memref<4x32x8xf32, #tpu.memory_space<vmem>>, %arg6: memref<4x32x8xf32, #tpu.memory_space<vmem>>, %arg7: memref<4x8x32xf32, #tpu.memory_space<vmem>>, %arg8: memref<1x32xf32, #tpu.memory_space<vmem>>, %arg9: memref<1x17x32xf32, #tpu.memory_space<vmem>>) attributes {dimension_semantics = [#tpu.dimension_semantics<parallel>], iteration_bounds = array<i64: 2>, scalar_prefetch = 0 : i64, scratch_operands = 0 : i64, tpu.core_type = #tpu.core_type<tc>, window_params = [{transform_indices = @transform_0, window_bounds = array<i64: 1, 17, 32>}, {pipeline_mode = #tpu.pipeline_mode<synchronous>, transform_indices = @transform_1, window_bounds = array<i64: 1, 32>}, {pipeline_mode = #tpu.pipeline_mode<synchronous>, transform_indices = @transform_2, window_bounds = array<i64: 1, 32>}, {pipeline_mode = #tpu.pipeline_mode<synchronous>, transform_indices = @transform_3, window_bounds = array<i64: 4, 32, 8>}, {pipeline_mode = #tpu.pipeline_mode<synchronous>, transform_indices = @transform_4, window_bounds = array<i64: 4, 32, 8>}, {pipeline_mode = #tpu.pipeline_mode<synchronous>, transform_indices = @transform_5, window_bounds = array<i64: 4, 32, 8>}, {pipeline_mode = #tpu.pipeline_mode<synchronous>, transform_indices = @transform_6, window_bounds = array<i64: 4, 8, 32>}, {pipeline_mode = #tpu.pipeline_mode<synchronous>, transform_indices = @transform_7, window_bounds = array<i64: 1, 32>}, {transform_indices = @transform_8, window_bounds = array<i64: 1, 17, 32>}]} {
    %c0 = arith.constant 0 : index
    %c0_0 = arith.constant 0 : index
    %c0_1 = arith.constant 0 : index
    %0 = vector.load %arg1[%c0, %c0_0, %c0_1] : memref<1x17x32xf32, #tpu.memory_space<vmem>>, vector<1x17x32xf32>
    %1 = vector.shape_cast %0 : vector<1x17x32xf32> to vector<17x32xf32>
    %cst = arith.constant dense<0.000000e+00> : vector<17xf32>
    %2 = vector.multi_reduction <add>, %1, %cst [1] : vector<17x32xf32> to vector<17xf32>
    %3 = vector.shape_cast %2 : vector<17xf32> to vector<17x1xf32>
    %cst_2 = arith.constant 3.200000e+01 : f32
    %4 = vector.broadcast %cst_2 : f32 to vector<17x1xf32>
    %5 = arith.divf %3, %4 : vector<17x1xf32>
    %6 = vector.broadcast %5 : vector<17x1xf32> to vector<17x32xf32>
    %7 = arith.subf %1, %6 : vector<17x32xf32>
    %8 = arith.mulf %7, %7 : vector<17x32xf32>
    %cst_3 = arith.constant dense<0.000000e+00> : vector<17xf32>
    %9 = vector.multi_reduction <add>, %8, %cst_3 [1] : vector<17x32xf32> to vector<17xf32>
    %10 = vector.shape_cast %9 : vector<17xf32> to vector<17x1xf32>
    %cst_4 = arith.constant 3.200000e+01 : f32
    %11 = vector.broadcast %cst_4 : f32 to vector<17x1xf32>
    %12 = arith.divf %10, %11 : vector<17x1xf32>
    %cst_5 = arith.constant 9.99999997E-7 : f32
    %13 = vector.broadcast %cst_5 : f32 to vector<17x1xf32>
    %14 = arith.addf %12, %13 : vector<17x1xf32>
    %15 = math.rsqrt %14 : vector<17x1xf32>
    %16 = vector.broadcast %15 : vector<17x1xf32> to vector<17x32xf32>
    %17 = arith.mulf %7, %16 : vector<17x32xf32>
    %c0_6 = arith.constant 0 : index
    %c0_7 = arith.constant 0 : index
    %18 = vector.load %arg2[%c0_6, %c0_7] : memref<1x32xf32, #tpu.memory_space<vmem>>, vector<1x32xf32>
    %19 = vector.broadcast %18 : vector<1x32xf32> to vector<17x32xf32>
    %20 = arith.mulf %17, %19 : vector<17x32xf32>
    %c0_8 = arith.constant 0 : index
    %c0_9 = arith.constant 0 : index
    %21 = vector.load %arg3[%c0_8, %c0_9] : memref<1x32xf32, #tpu.memory_space<vmem>>, vector<1x32xf32>
    %22 = vector.broadcast %21 : vector<1x32xf32> to vector<17x32xf32>
    %23 = arith.addf %20, %22 : vector<17x32xf32>
    %c0_10 = arith.constant 0 : index
    %c0_11 = arith.constant 0 : index
    %24 = vector.load %arg8[%c0_10, %c0_11] : memref<1x32xf32, #tpu.memory_space<vmem>>, vector<1x32xf32>
    %25 = vector.broadcast %24 : vector<1x32xf32> to vector<17x32xf32>
    %26 = arith.addf %1, %25 : vector<17x32xf32>
    %c0_12 = arith.constant 0 : index
    %c0_13 = arith.constant 0 : index
    %c0_14 = arith.constant 0 : index
    %27 = vector.load %arg4[%c0_12, %c0_13, %c0_14] : memref<4x32x8xf32, #tpu.memory_space<vmem>>, vector<1x32x8xf32>
    %28 = vector.shape_cast %27 : vector<1x32x8xf32> to vector<32x8xf32>
    %cst_15 = arith.constant dense<0.000000e+00> : vector<17x8xf32>
    %29 = tpu.matmul %23, %28, %cst_15 {dimension_numbers = #tpu.dot_dimension_numbers<[1], [0], [0], [1], [0, 0, 1, 1], [], []>} : vector<17x32xf32>, vector<32x8xf32>, vector<17x8xf32> -> vector<17x8xf32>
    %cst_16 = arith.constant 0.353553385 : f32
    %30 = vector.broadcast %cst_16 : f32 to vector<17x8xf32>
    %31 = arith.mulf %29, %30 : vector<17x8xf32>
    %c0_17 = arith.constant 0 : index
    %c0_18 = arith.constant 0 : index
    %c0_19 = arith.constant 0 : index
    %32 = vector.load %arg5[%c0_17, %c0_18, %c0_19] : memref<4x32x8xf32, #tpu.memory_space<vmem>>, vector<1x32x8xf32>
    %33 = vector.shape_cast %32 : vector<1x32x8xf32> to vector<32x8xf32>
    %cst_20 = arith.constant dense<0.000000e+00> : vector<17x8xf32>
    %34 = tpu.matmul %23, %33, %cst_20 {dimension_numbers = #tpu.dot_dimension_numbers<[1], [0], [0], [1], [0, 0, 1, 1], [], []>} : vector<17x32xf32>, vector<32x8xf32>, vector<17x8xf32> -> vector<17x8xf32>
    %c0_21 = arith.constant 0 : index
    %c0_22 = arith.constant 0 : index
    %c0_23 = arith.constant 0 : index
    %35 = vector.load %arg6[%c0_21, %c0_22, %c0_23] : memref<4x32x8xf32, #tpu.memory_space<vmem>>, vector<1x32x8xf32>
    %36 = vector.shape_cast %35 : vector<1x32x8xf32> to vector<32x8xf32>
    %cst_24 = arith.constant dense<0.000000e+00> : vector<17x8xf32>
    %37 = tpu.matmul %23, %36, %cst_24 {dimension_numbers = #tpu.dot_dimension_numbers<[1], [0], [0], [1], [0, 0, 1, 1], [], []>} : vector<17x32xf32>, vector<32x8xf32>, vector<17x8xf32> -> vector<17x8xf32>
    %cst_25 = arith.constant dense<0.000000e+00> : vector<17x17xf32>
    %38 = tpu.matmul %31, %34, %cst_25 {dimension_numbers = #tpu.dot_dimension_numbers<[1], [1], [0], [0], [0, 0, 1, 0], [], []>} : vector<17x8xf32>, vector<17x8xf32>, vector<17x17xf32> -> vector<17x17xf32>
    %cst_26 = arith.constant dense<0xFF800000> : vector<17xf32>
    %39 = vector.multi_reduction <maximumf>, %38, %cst_26 [1] : vector<17x17xf32> to vector<17xf32>
    %40 = vector.shape_cast %39 : vector<17xf32> to vector<17x1xf32>
    %41 = vector.broadcast %40 : vector<17x1xf32> to vector<17x17xf32>
    %42 = arith.subf %38, %41 : vector<17x17xf32>
    %43 = math.exp %42 : vector<17x17xf32>
    %cst_27 = arith.constant dense<0.000000e+00> : vector<17xf32>
    %44 = vector.multi_reduction <add>, %43, %cst_27 [1] : vector<17x17xf32> to vector<17xf32>
    %45 = vector.shape_cast %44 : vector<17xf32> to vector<17x1xf32>
    %46 = tpu.reciprocal %45 : vector<17x1xf32> -> vector<17x1xf32>
    %47 = vector.broadcast %46 : vector<17x1xf32> to vector<17x17xf32>
    %48 = arith.mulf %43, %47 : vector<17x17xf32>
    %cst_28 = arith.constant dense<0.000000e+00> : vector<17x8xf32>
    %49 = tpu.matmul %48, %37, %cst_28 {dimension_numbers = #tpu.dot_dimension_numbers<[1], [0], [0], [1], [0, 0, 1, 1], [], []>} : vector<17x17xf32>, vector<17x8xf32>, vector<17x8xf32> -> vector<17x8xf32>
    %c0_29 = arith.constant 0 : index
    %c0_30 = arith.constant 0 : index
    %c0_31 = arith.constant 0 : index
    %50 = vector.load %arg7[%c0_29, %c0_30, %c0_31] : memref<4x8x32xf32, #tpu.memory_space<vmem>>, vector<1x8x32xf32>
    %51 = vector.shape_cast %50 : vector<1x8x32xf32> to vector<8x32xf32>
    %cst_32 = arith.constant dense<0.000000e+00> : vector<17x32xf32>
    %52 = tpu.matmul %49, %51, %cst_32 {dimension_numbers = #tpu.dot_dimension_numbers<[1], [0], [0], [1], [0, 0, 1, 1], [], []>} : vector<17x8xf32>, vector<8x32xf32>, vector<17x32xf32> -> vector<17x32xf32>
    %53 = arith.addf %26, %52 : vector<17x32xf32>
    %c1 = arith.constant 1 : index
    %c0_33 = arith.constant 0 : index
    %c0_34 = arith.constant 0 : index
    %54 = vector.load %arg4[%c1, %c0_33, %c0_34] : memref<4x32x8xf32, #tpu.memory_space<vmem>>, vector<1x32x8xf32>
    %55 = vector.shape_cast %54 : vector<1x32x8xf32> to vector<32x8xf32>
    %cst_35 = arith.constant dense<0.000000e+00> : vector<17x8xf32>
    %56 = tpu.matmul %23, %55, %cst_35 {dimension_numbers = #tpu.dot_dimension_numbers<[1], [0], [0], [1], [0, 0, 1, 1], [], []>} : vector<17x32xf32>, vector<32x8xf32>, vector<17x8xf32> -> vector<17x8xf32>
    %cst_36 = arith.constant 0.353553385 : f32
    %57 = vector.broadcast %cst_36 : f32 to vector<17x8xf32>
    %58 = arith.mulf %56, %57 : vector<17x8xf32>
    %c1_37 = arith.constant 1 : index
    %c0_38 = arith.constant 0 : index
    %c0_39 = arith.constant 0 : index
    %59 = vector.load %arg5[%c1_37, %c0_38, %c0_39] : memref<4x32x8xf32, #tpu.memory_space<vmem>>, vector<1x32x8xf32>
    %60 = vector.shape_cast %59 : vector<1x32x8xf32> to vector<32x8xf32>
    %cst_40 = arith.constant dense<0.000000e+00> : vector<17x8xf32>
    %61 = tpu.matmul %23, %60, %cst_40 {dimension_numbers = #tpu.dot_dimension_numbers<[1], [0], [0], [1], [0, 0, 1, 1], [], []>} : vector<17x32xf32>, vector<32x8xf32>, vector<17x8xf32> -> vector<17x8xf32>
    %c1_41 = arith.constant 1 : index
    %c0_42 = arith.constant 0 : index
    %c0_43 = arith.constant 0 : index
    %62 = vector.load %arg6[%c1_41, %c0_42, %c0_43] : memref<4x32x8xf32, #tpu.memory_space<vmem>>, vector<1x32x8xf32>
    %63 = vector.shape_cast %62 : vector<1x32x8xf32> to vector<32x8xf32>
    %cst_44 = arith.constant dense<0.000000e+00> : vector<17x8xf32>
    %64 = tpu.matmul %23, %63, %cst_44 {dimension_numbers = #tpu.dot_dimension_numbers<[1], [0], [0], [1], [0, 0, 1, 1], [], []>} : vector<17x32xf32>, vector<32x8xf32>, vector<17x8xf32> -> vector<17x8xf32>
    %cst_45 = arith.constant dense<0.000000e+00> : vector<17x17xf32>
    %65 = tpu.matmul %58, %61, %cst_45 {dimension_numbers = #tpu.dot_dimension_numbers<[1], [1], [0], [0], [0, 0, 1, 0], [], []>} : vector<17x8xf32>, vector<17x8xf32>, vector<17x17xf32> -> vector<17x17xf32>
    %cst_46 = arith.constant dense<0xFF800000> : vector<17xf32>
    %66 = vector.multi_reduction <maximumf>, %65, %cst_46 [1] : vector<17x17xf32> to vector<17xf32>
    %67 = vector.shape_cast %66 : vector<17xf32> to vector<17x1xf32>
    %68 = vector.broadcast %67 : vector<17x1xf32> to vector<17x17xf32>
    %69 = arith.subf %65, %68 : vector<17x17xf32>
    %70 = math.exp %69 : vector<17x17xf32>
    %cst_47 = arith.constant dense<0.000000e+00> : vector<17xf32>
    %71 = vector.multi_reduction <add>, %70, %cst_47 [1] : vector<17x17xf32> to vector<17xf32>
    %72 = vector.shape_cast %71 : vector<17xf32> to vector<17x1xf32>
    %73 = tpu.reciprocal %72 : vector<17x1xf32> -> vector<17x1xf32>
    %74 = vector.broadcast %73 : vector<17x1xf32> to vector<17x17xf32>
    %75 = arith.mulf %70, %74 : vector<17x17xf32>
    %cst_48 = arith.constant dense<0.000000e+00> : vector<17x8xf32>
    %76 = tpu.matmul %75, %64, %cst_48 {dimension_numbers = #tpu.dot_dimension_numbers<[1], [0], [0], [1], [0, 0, 1, 1], [], []>} : vector<17x17xf32>, vector<17x8xf32>, vector<17x8xf32> -> vector<17x8xf32>
    %c1_49 = arith.constant 1 : index
    %c0_50 = arith.constant 0 : index
    %c0_51 = arith.constant 0 : index
    %77 = vector.load %arg7[%c1_49, %c0_50, %c0_51] : memref<4x8x32xf32, #tpu.memory_space<vmem>>, vector<1x8x32xf32>
    %78 = vector.shape_cast %77 : vector<1x8x32xf32> to vector<8x32xf32>
    %cst_52 = arith.constant dense<0.000000e+00> : vector<17x32xf32>
    %79 = tpu.matmul %76, %78, %cst_52 {dimension_numbers = #tpu.dot_dimension_numbers<[1], [0], [0], [1], [0, 0, 1, 1], [], []>} : vector<17x8xf32>, vector<8x32xf32>, vector<17x32xf32> -> vector<17x32xf32>
    %80 = arith.addf %53, %79 : vector<17x32xf32>
    %c2 = arith.constant 2 : index
    %c0_53 = arith.constant 0 : index
    %c0_54 = arith.constant 0 : index
    %81 = vector.load %arg4[%c2, %c0_53, %c0_54] : memref<4x32x8xf32, #tpu.memory_space<vmem>>, vector<1x32x8xf32>
    %82 = vector.shape_cast %81 : vector<1x32x8xf32> to vector<32x8xf32>
    %cst_55 = arith.constant dense<0.000000e+00> : vector<17x8xf32>
    %83 = tpu.matmul %23, %82, %cst_55 {dimension_numbers = #tpu.dot_dimension_numbers<[1], [0], [0], [1], [0, 0, 1, 1], [], []>} : vector<17x32xf32>, vector<32x8xf32>, vector<17x8xf32> -> vector<17x8xf32>
    %cst_56 = arith.constant 0.353553385 : f32
    %84 = vector.broadcast %cst_56 : f32 to vector<17x8xf32>
    %85 = arith.mulf %83, %84 : vector<17x8xf32>
    %c2_57 = arith.constant 2 : index
    %c0_58 = arith.constant 0 : index
    %c0_59 = arith.constant 0 : index
    %86 = vector.load %arg5[%c2_57, %c0_58, %c0_59] : memref<4x32x8xf32, #tpu.memory_space<vmem>>, vector<1x32x8xf32>
    %87 = vector.shape_cast %86 : vector<1x32x8xf32> to vector<32x8xf32>
    %cst_60 = arith.constant dense<0.000000e+00> : vector<17x8xf32>
    %88 = tpu.matmul %23, %87, %cst_60 {dimension_numbers = #tpu.dot_dimension_numbers<[1], [0], [0], [1], [0, 0, 1, 1], [], []>} : vector<17x32xf32>, vector<32x8xf32>, vector<17x8xf32> -> vector<17x8xf32>
    %c2_61 = arith.constant 2 : index
    %c0_62 = arith.constant 0 : index
    %c0_63 = arith.constant 0 : index
    %89 = vector.load %arg6[%c2_61, %c0_62, %c0_63] : memref<4x32x8xf32, #tpu.memory_space<vmem>>, vector<1x32x8xf32>
    %90 = vector.shape_cast %89 : vector<1x32x8xf32> to vector<32x8xf32>
    %cst_64 = arith.constant dense<0.000000e+00> : vector<17x8xf32>
    %91 = tpu.matmul %23, %90, %cst_64 {dimension_numbers = #tpu.dot_dimension_numbers<[1], [0], [0], [1], [0, 0, 1, 1], [], []>} : vector<17x32xf32>, vector<32x8xf32>, vector<17x8xf32> -> vector<17x8xf32>
    %cst_65 = arith.constant dense<0.000000e+00> : vector<17x17xf32>
    %92 = tpu.matmul %85, %88, %cst_65 {dimension_numbers = #tpu.dot_dimension_numbers<[1], [1], [0], [0], [0, 0, 1, 0], [], []>} : vector<17x8xf32>, vector<17x8xf32>, vector<17x17xf32> -> vector<17x17xf32>
    %cst_66 = arith.constant dense<0xFF800000> : vector<17xf32>
    %93 = vector.multi_reduction <maximumf>, %92, %cst_66 [1] : vector<17x17xf32> to vector<17xf32>
    %94 = vector.shape_cast %93 : vector<17xf32> to vector<17x1xf32>
    %95 = vector.broadcast %94 : vector<17x1xf32> to vector<17x17xf32>
    %96 = arith.subf %92, %95 : vector<17x17xf32>
    %97 = math.exp %96 : vector<17x17xf32>
    %cst_67 = arith.constant dense<0.000000e+00> : vector<17xf32>
    %98 = vector.multi_reduction <add>, %97, %cst_67 [1] : vector<17x17xf32> to vector<17xf32>
    %99 = vector.shape_cast %98 : vector<17xf32> to vector<17x1xf32>
    %100 = tpu.reciprocal %99 : vector<17x1xf32> -> vector<17x1xf32>
    %101 = vector.broadcast %100 : vector<17x1xf32> to vector<17x17xf32>
    %102 = arith.mulf %97, %101 : vector<17x17xf32>
    %cst_68 = arith.constant dense<0.000000e+00> : vector<17x8xf32>
    %103 = tpu.matmul %102, %91, %cst_68 {dimension_numbers = #tpu.dot_dimension_numbers<[1], [0], [0], [1], [0, 0, 1, 1], [], []>} : vector<17x17xf32>, vector<17x8xf32>, vector<17x8xf32> -> vector<17x8xf32>
    %c2_69 = arith.constant 2 : index
    %c0_70 = arith.constant 0 : index
    %c0_71 = arith.constant 0 : index
    %104 = vector.load %arg7[%c2_69, %c0_70, %c0_71] : memref<4x8x32xf32, #tpu.memory_space<vmem>>, vector<1x8x32xf32>
    %105 = vector.shape_cast %104 : vector<1x8x32xf32> to vector<8x32xf32>
    %cst_72 = arith.constant dense<0.000000e+00> : vector<17x32xf32>
    %106 = tpu.matmul %103, %105, %cst_72 {dimension_numbers = #tpu.dot_dimension_numbers<[1], [0], [0], [1], [0, 0, 1, 1], [], []>} : vector<17x8xf32>, vector<8x32xf32>, vector<17x32xf32> -> vector<17x32xf32>
    %107 = arith.addf %80, %106 : vector<17x32xf32>
    %c3 = arith.constant 3 : index
    %c0_73 = arith.constant 0 : index
    %c0_74 = arith.constant 0 : index
    %108 = vector.load %arg4[%c3, %c0_73, %c0_74] : memref<4x32x8xf32, #tpu.memory_space<vmem>>, vector<1x32x8xf32>
    %109 = vector.shape_cast %108 : vector<1x32x8xf32> to vector<32x8xf32>
    %cst_75 = arith.constant dense<0.000000e+00> : vector<17x8xf32>
    %110 = tpu.matmul %23, %109, %cst_75 {dimension_numbers = #tpu.dot_dimension_numbers<[1], [0], [0], [1], [0, 0, 1, 1], [], []>} : vector<17x32xf32>, vector<32x8xf32>, vector<17x8xf32> -> vector<17x8xf32>
    %cst_76 = arith.constant 0.353553385 : f32
    %111 = vector.broadcast %cst_76 : f32 to vector<17x8xf32>
    %112 = arith.mulf %110, %111 : vector<17x8xf32>
    %c3_77 = arith.constant 3 : index
    %c0_78 = arith.constant 0 : index
    %c0_79 = arith.constant 0 : index
    %113 = vector.load %arg5[%c3_77, %c0_78, %c0_79] : memref<4x32x8xf32, #tpu.memory_space<vmem>>, vector<1x32x8xf32>
    %114 = vector.shape_cast %113 : vector<1x32x8xf32> to vector<32x8xf32>
    %cst_80 = arith.constant dense<0.000000e+00> : vector<17x8xf32>
    %115 = tpu.matmul %23, %114, %cst_80 {dimension_numbers = #tpu.dot_dimension_numbers<[1], [0], [0], [1], [0, 0, 1, 1], [], []>} : vector<17x32xf32>, vector<32x8xf32>, vector<17x8xf32> -> vector<17x8xf32>
    %c3_81 = arith.constant 3 : index
    %c0_82 = arith.constant 0 : index
    %c0_83 = arith.constant 0 : index
    %116 = vector.load %arg6[%c3_81, %c0_82, %c0_83] : memref<4x32x8xf32, #tpu.memory_space<vmem>>, vector<1x32x8xf32>
    %117 = vector.shape_cast %116 : vector<1x32x8xf32> to vector<32x8xf32>
    %cst_84 = arith.constant dense<0.000000e+00> : vector<17x8xf32>
    %118 = tpu.matmul %23, %117, %cst_84 {dimension_numbers = #tpu.dot_dimension_numbers<[1], [0], [0], [1], [0, 0, 1, 1], [], []>} : vector<17x32xf32>, vector<32x8xf32>, vector<17x8xf32> -> vector<17x8xf32>
    %cst_85 = arith.constant dense<0.000000e+00> : vector<17x17xf32>
    %119 = tpu.matmul %112, %115, %cst_85 {dimension_numbers = #tpu.dot_dimension_numbers<[1], [1], [0], [0], [0, 0, 1, 0], [], []>} : vector<17x8xf32>, vector<17x8xf32>, vector<17x17xf32> -> vector<17x17xf32>
    %cst_86 = arith.constant dense<0xFF800000> : vector<17xf32>
    %120 = vector.multi_reduction <maximumf>, %119, %cst_86 [1] : vector<17x17xf32> to vector<17xf32>
    %121 = vector.shape_cast %120 : vector<17xf32> to vector<17x1xf32>
    %122 = vector.broadcast %121 : vector<17x1xf32> to vector<17x17xf32>
    %123 = arith.subf %119, %122 : vector<17x17xf32>
    %124 = math.exp %123 : vector<17x17xf32>
    %cst_87 = arith.constant dense<0.000000e+00> : vector<17xf32>
    %125 = vector.multi_reduction <add>, %124, %cst_87 [1] : vector<17x17xf32> to vector<17xf32>
    %126 = vector.shape_cast %125 : vector<17xf32> to vector<17x1xf32>
    %127 = tpu.reciprocal %126 : vector<17x1xf32> -> vector<17x1xf32>
    %128 = vector.broadcast %127 : vector<17x1xf32> to vector<17x17xf32>
    %129 = arith.mulf %124, %128 : vector<17x17xf32>
    %cst_88 = arith.constant dense<0.000000e+00> : vector<17x8xf32>
    %130 = tpu.matmul %129, %118, %cst_88 {dimension_numbers = #tpu.dot_dimension_numbers<[1], [0], [0], [1], [0, 0, 1, 1], [], []>} : vector<17x17xf32>, vector<17x8xf32>, vector<17x8xf32> -> vector<17x8xf32>
    %c3_89 = arith.constant 3 : index
    %c0_90 = arith.constant 0 : index
    %c0_91 = arith.constant 0 : index
    %131 = vector.load %arg7[%c3_89, %c0_90, %c0_91] : memref<4x8x32xf32, #tpu.memory_space<vmem>>, vector<1x8x32xf32>
    %132 = vector.shape_cast %131 : vector<1x8x32xf32> to vector<8x32xf32>
    %cst_92 = arith.constant dense<0.000000e+00> : vector<17x32xf32>
    %133 = tpu.matmul %130, %132, %cst_92 {dimension_numbers = #tpu.dot_dimension_numbers<[1], [0], [0], [1], [0, 0, 1, 1], [], []>} : vector<17x8xf32>, vector<8x32xf32>, vector<17x32xf32> -> vector<17x32xf32>
    %134 = arith.addf %107, %133 : vector<17x32xf32>
    %c0_93 = arith.constant 0 : index
    %c0_94 = arith.constant 0 : index
    %c0_95 = arith.constant 0 : index
    %135 = vector.load %arg9[%c0_93, %c0_94, %c0_95] : memref<1x17x32xf32, #tpu.memory_space<vmem>>, vector<1x17x32xf32>
    %136 = vector.shape_cast %135 : vector<1x17x32xf32> to vector<17x32xf32>
    %137 = vector.shape_cast %134 : vector<17x32xf32> to vector<1x17x32xf32>
    tpu.vector_store %arg9[%c0_93, %c0_94, %c0_95], %137 {strides = array<i32>} : memref<1x17x32xf32, #tpu.memory_space<vmem>>, vector<1x17x32xf32>,
    return
  }
  func.func @transform_0(%arg0: i32) -> (i32, i32, i32) {
    %c0_i32 = arith.constant 0 : i32
    %c0_i32_0 = arith.constant 0 : i32
    %c0_i32_1 = arith.constant 0 : i32
    return %arg0, %c0_i32, %c0_i32_0 : i32, i32, i32
  }
  func.func @transform_1(%arg0: i32) -> (i32, i32) {
    %c0_i32 = arith.constant 0 : i32
    %c0_i32_0 = arith.constant 0 : i32
    %c0_i32_1 = arith.constant 0 : i32
    return %c0_i32, %c0_i32_0 : i32, i32
  }
  func.func @transform_2(%arg0: i32) -> (i32, i32) {
    %c0_i32 = arith.constant 0 : i32
    %c0_i32_0 = arith.constant 0 : i32
    %c0_i32_1 = arith.constant 0 : i32
    return %c0_i32, %c0_i32_0 : i32, i32
  }
  func.func @transform_3(%arg0: i32) -> (i32, i32, i32) {
    %c0_i32 = arith.constant 0 : i32
    %c0_i32_0 = arith.constant 0 : i32
    %c0_i32_1 = arith.constant 0 : i32
    %c0_i32_2 = arith.constant 0 : i32
    return %c0_i32, %c0_i32_0, %c0_i32_1 : i32, i32, i32
  }
  func.func @transform_4(%arg0: i32) -> (i32, i32, i32) {
    %c0_i32 = arith.constant 0 : i32
    %c0_i32_0 = arith.constant 0 : i32
    %c0_i32_1 = arith.constant 0 : i32
    %c0_i32_2 = arith.constant 0 : i32
    return %c0_i32, %c0_i32_0, %c0_i32_1 : i32, i32, i32
  }
  func.func @transform_5(%arg0: i32) -> (i32, i32, i32) {
    %c0_i32 = arith.constant 0 : i32
    %c0_i32_0 = arith.constant 0 : i32
    %c0_i32_1 = arith.constant 0 : i32
    %c0_i32_2 = arith.constant 0 : i32
    return %c0_i32, %c0_i32_0, %c0_i32_1 : i32, i32, i32
  }
  func.func @transform_6(%arg0: i32) -> (i32, i32, i32) {
    %c0_i32 = arith.constant 0 : i32
    %c0_i32_0 = arith.constant 0 : i32
    %c0_i32_1 = arith.constant 0 : i32
    %c0_i32_2 = arith.constant 0 : i32
    return %c0_i32, %c0_i32_0, %c0_i32_1 : i32, i32, i32
  }
  func.func @transform_7(%arg0: i32) -> (i32, i32) {
    %c0_i32 = arith.constant 0 : i32
    %c0_i32_0 = arith.constant 0 : i32
    %c0_i32_1 = arith.constant 0 : i32
    return %c0_i32, %c0_i32_0 : i32, i32
  }
  func.func @transform_8(%arg0: i32) -> (i32, i32, i32) {
    %c0_i32 = arith.constant 0 : i32
    %c0_i32_0 = arith.constant 0 : i32
    %c0_i32_1 = arith.constant 0 : i32
    return %arg0, %c0_i32, %c0_i32_0 : i32, i32, i32
  }
}

</mosaic_0001>

<bundles_post_ra>
// kernel: tpu_custom_call.1
= control target key start
LH: loop header
LB: loop body
LE: loop exit
PB: predicated region body
PF: predicated region fallthrough
CT: control target
= control target key end

     0   :  { %s3523_s27 = smov 0   ;;  %s4142_s0 = inlined_call_operand.vmem [shape: f32[2,17,32], index: 0, kind: input, shape index: {}]   ;;  %s4143_s1 = inlined_call_operand.vmem [shape: f32[1,32], index: 1, kind: input, shape index: {}]   ;;  %s4144_s2 = inlined_call_operand.vmem [shape: f32[1,32], index: 2, kind: input, shape index: {}]   ;;  %s4145_s3 = inlined_call_operand.vmem [shape: f32[4,32,8], index: 3, kind: input, shape index: {}]   ;;  %s4146_s4 = inlined_call_operand.vmem [shape: f32[4,32,8], index: 4, kind: input, shape index: {}]   ;;  %s4147_s5 = inlined_call_operand.vmem [shape: f32[4,32,8], index: 5, kind: input, shape index: {}]   ;;  %s4148_s6 = inlined_call_operand.vmem [shape: f32[4,8,32], index: 6, kind: input, shape index: {}]   ;;  %s4149_s7 = inlined_call_operand.vmem [shape: f32[1,32], index: 7, kind: input, shape index: {}]   ;;  %s4150_s8 = inlined_call_operand.vmem [shape: f32[2,17,32], index: 8, kind: output, shape index: {}]  }
   0x1 LB: > { %s2748_s28 = sadd.s32 4294967295, %s3474_s27   ;;  %p2752_p0 = scmp.ge.s32.totalorder %s3474_s27, 1  ;;  %s3474_s27 = sphi %s3523_s27, %s18_s27  }
   0x2   : > { %p262_p1 = scmp.lt.s32.totalorder %s3474_s27, 3 }
   0x4   : > { %p263_p2 = pnand %p2752_p0, %p262_p1 }
   0x5   : > { %p296_p3 = scmp.lt.s32.totalorder (!%p263_p2), %s2748_s28, 1 }
   0x6   : > { %266 = sbr.rel (%p263_p2) target bundleno = 4205 (0x106d), region = 52 }
   0xb   : > { %s4152_s28 = smov (!%p296_p3, %s2748_s28), 1  ;;  %vm309_vm0 = vcmask 261120   ;;  %vm316_vm1 = vcmask 253952   ;;  %v3476_v21 = vmov 0.0   ;;  %v384_v22 = vld [vmem:[%s4145_s3 + $0x18] sm:$0xff]  ;;  %v383_v24 = vld [vmem:[%s4145_s3 + $0x10] sm:$0xff] }
   0xc   : > { %s3403_s29 = smul.u32 24, %s4152_s28  ;;  %3035 = vmatprep.subr.mxu0 %v3476_v21  ;;  %3052 = vmatprep.subr.mxu1 %v3476_v21  ;;  %v480_v23 = vld [vmem:[%s4146_s4 + $0x18] sm:$0xff]  ;;  %v479_v25 = vld [vmem:[%s4146_s4 + $0x10] sm:$0xff]  ;;  %v382_v26 = vld [vmem:[%s4145_s3 + $0x8] sm:$0xff]  ;;  %vm3477_vm2 = vmmov 0   ;;  %vm645_vm3 = vcmask 64512  }
   0xd   : > { %3036 = vmatpush3.msra.mxu0 %v384_v22  ;;  %3053 = vmatpush3.msra.mxu1 %v480_v23  ;;  %v478_v27 = vld [vmem:[%s4146_s4 + $0x8] sm:$0xff]  ;;  %v381_v28 = vld [vmem:[%s4145_s3] sm:$0xff]  ;;  %v564_v49 = vld [vmem:[%s4147_s5 + $0x18] sm:$0xff]  ;;  %vm788_vm4 = vcmask 1040384   ;;  %vm744_vm5 = vcmask 138240   ;;  %vm751_vm6 = vcmask 131072  }
   0xe   : > { %s300_s10 = scalar_lea.vmem %s4142_s0, %s3403_s29  ;;  %3037 = vmatprep.subr.mxu0 %v3476_v21  ;;  %3054 = vmatprep.subr.mxu1 %v3476_v21  ;;  %v477_v29 = vld [vmem:[%s4146_s4] sm:$0xff]  ;;  %v563_v51 = vld [vmem:[%s4147_s5 + $0x10] sm:$0xff]  ;;  %v562_v54 = vld [vmem:[%s4147_s5 + $0x8] sm:$0xff]  ;;  %s305_s9 = scalar_lea.vmem %s4150_s8, %s3403_s29 }
   0xf   : > { %v3539_v0 = vld [vmem:[%s300_s10] sm:$0xff]  ;;  %v3541_v1 = vld [vmem:[%s300_s10 + $0x10] sm:$0x1]  ;;  %v3543_v2 = vld [vmem:[%s300_s10 + $0x8] sm:$0xff]  ;;  %3038 = vmatpush3.msra.mxu0 %v383_v24  ;;  %3055 = vmatpush3.msra.mxu1 %v479_v25 }
  0x10   : > { %v310_v3 = vsel %vm309_vm0, %v3539_v0, 0.0  ;;  %v317_v4 = vsel %vm316_vm1, %v3541_v1, 0.0  ;;  %v313_v5 = vsel %vm309_vm0, %v3543_v2, 0.0  ;;  %3039 = vmatprep.subr.mxu0 %v3476_v21  ;;  %3056 = vmatprep.subr.mxu1 %v3476_v21  ;;  %v2755_v40 = vld [vmem:[%s4143_s1] ss:$0 sm:$0xff] }
  0x11   : > { %311 = vadd.xlane.f32.xlu0 %v310_v3  ;;  %318 = vadd.xlane.f32.xlu1 %v317_v4  ;;  %v2756_v42 = vld [vmem:[%s4144_s2] ss:$0 sm:$0xff] }
  0x12   : > { %3040 = vmatpush3.msra.mxu0 %v382_v26  ;;  %3057 = vmatpush3.msra.mxu1 %v478_v27  ;;  %v561_v56 = vld [vmem:[%s4147_s5] sm:$0xff] }
  0x13   : > { %3041 = vmatprep.subr.mxu0 %v3476_v21  ;;  %3058 = vmatprep.subr.mxu1 %v3476_v21 }
  0x14   : > { %3042 = vmatpush3.msra.mxu0 %v381_v28  ;;  %3043 = vmatprep.mubr.msk.f32.mxu0 %vm3477_vm2, %v3476_v21 }
  0x15   : > { %314 = vadd.xlane.f32.xlu0 %v313_v5  ;;  %3059 = vmatpush3.msra.mxu1 %v477_v29 }
  0x16   : > { %3060 = vmatprep.mubr.msk.f32.mxu1 %vm3477_vm2, %v3476_v21  ;;  %3069 = vmatprep.subr.mxu0 %v3476_v21 }
  0x17   : > { %3086 = vmatprep.subr.mxu1 %v3476_v21 }
  0x9a   : > { %v312_v6 = vpop.xlane.xlu0 %311  ;;  %v319_v7 = vpop.xlane.xlu1 %318 }
  0x9b   : > { %v321_v8 = vmul.f32 0.03125, %v312_v6  ;;  %v323_v9 = vmul.f32 0.03125, %v319_v7 }
  0x9d   : > { %v324_v10 = vsub.f32 %v3539_v0, %v321_v8  ;;  %v3553_v11 = vsub.f32 %v3541_v1, %v323_v9 }
  0x9e   : > { %v315_v12 = vpop.xlane.xlu0 %314 }
  0x9f   : > { %v322_v13 = vmul.f32 0.03125, %v315_v12  ;;  %v327_v14 = vmul.f32 %v324_v10, %v324_v10  ;;  %v329_v15 = vmul.f32 %v3553_v11, %v3553_v11 }
  0xa1   : > { %v325_v16 = vsub.f32 %v3543_v2, %v322_v13  ;;  %v330_v17 = vsel %vm309_vm0, %v327_v14, 0.0  ;;  %v336_v18 = vsel %vm316_vm1, %v329_v15, 0.0 }
  0xa2   : > { %331 = vadd.xlane.f32.xlu1 %v330_v17 }
  0xa3   : > { %v328_v19 = vmul.f32 %v325_v16, %v325_v16 }
  0xa5   : > { %v333_v20 = vsel %vm309_vm0, %v328_v19, 0.0 }
  0xa6   : > { %337 = vadd.xlane.f32.xlu1 %v336_v18  ;;  %334 = vadd.xlane.f32.xlu0 %v333_v20 }
 0x12b   : > { %v332_v30 = vpop.xlane.xlu1 %331 }
 0x12c   : > { %v339_v31 = vmul.f32 0.03125, %v332_v30 }
 0x12e   : > { %v342_v32 = vadd.f32 1e-06, %v339_v31 }
 0x12f   : > { %v338_v33 = vpop.xlane.xlu1 %337  ;;  %v335_v34 = vpop.xlane.xlu0 %334 }
 0x130   : > { %3414 = vrsqrt.f32 %v342_v32  ;;  %v341_v35 = vmul.f32 0.03125, %v338_v33  ;;  %v340_v36 = vmul.f32 0.03125, %v335_v34 }
 0x132   : > { %v344_v37 = vadd.f32 1e-06, %v341_v35  ;;  %v343_v38 = vadd.f32 1e-06, %v340_v36 }
 0x134   : > { %3416 = vrsqrt.f32 %v344_v37 }
 0x135   : > { %3418 = vrsqrt.f32 %v343_v38 }
 0x13d   : > { %v3415_v39 = vpop.eup %3414 }
 0x13e   : > { %v348_v41 = vmul.f32 %v3415_v39, %v324_v10 }
 0x140   : > { %v358_v43 = vmul.f32 %v2755_v40, %v348_v41 }
 0x141   : > { %v3417_v44 = vpop.eup %3416 }
 0x142   : > { %v3419_v45 = vpop.eup %3418  ;;  %v3605_v46 = vadd.f32 %v2756_v42, %v358_v43  ;;  %v350_v47 = vmul.f32 %v3417_v44, %v3553_v11 }
 0x143   : > { %v349_v48 = vmul.f32 %v3419_v45, %v325_v16 }
 0x144   : > { %3044 = vmatmul.mubr.msk.f32.vlgmr.msra.gmra.mxu0 %vm309_vm0, %v3605_v46  ;;  %3061 = vmatmul.mubr.msk.f32.vlgmr.msra.gmra.mxu1 %vm309_vm0, %v3605_v46  ;;  %v360_v52 = vmul.f32 %v2755_v40, %v350_v47 }
 0x145   : > { %v359_v50 = vmul.f32 %v2755_v40, %v349_v48  ;;  %3046 = vmatprep.mubr.msk.f32.mxu0 %vm3477_vm2, %v3476_v21  ;;  %3063 = vmatprep.mubr.msk.f32.mxu1 %vm3477_vm2, %v3476_v21 }
 0x146   : > { %3070 = vmatpush3.msra.mxu0 %v564_v49  ;;  %v3636_v55 = vadd.f32 %v2756_v42, %v360_v52  ;;  %v2783_v49 = vld [vmem:[%s4145_s3 + $0x38] sm:$0xff] }
 0x147   : > { %v3622_v53 = vadd.f32 %v2756_v42, %v359_v50  ;;  %3071 = vmatprep.subr.mxu0 %v3476_v21  ;;  %v872_v42 = vld [vmem:[%s4148_s6] sm:$0xff]  ;;  %v2782_v50 = vld [vmem:[%s4145_s3 + $0x30] sm:$0xff] }
 0x148   : > { %3072 = vmatpush3.msra.mxu0 %v563_v51 }
 0x149   : > { %3047 = vmatmul.mubr.msk.f32.gmra.mxu0 %vm309_vm0, %v3622_v53  ;;  %3064 = vmatmul.mubr.msk.f32.gmra.mxu1 %vm309_vm0, %v3622_v53 }
 0x14a   : > { %3049 = vmatprep.mubr.msk.f32.mxu0 %vm3477_vm2, %v3476_v21  ;;  %3066 = vmatprep.mubr.msk.f32.mxu1 %vm3477_vm2, %v3476_v21 }
 0x14b   : > { %3073 = vmatprep.subr.mxu0 %v3476_v21 }
 0x14c   : > { %3074 = vmatpush3.msra.mxu0 %v562_v54  ;;  %v2781_v54 = vld [vmem:[%s4145_s3 + $0x28] sm:$0xff] }
 0x14d   : > { %3050 = vmatmul.mubr.msk.f32.gmra.mxu0 %vm309_vm0, %v3636_v55  ;;  %3067 = vmatmul.mubr.msk.f32.gmra.mxu1 %vm309_vm0, %v3636_v55 }
 0x14e   : > { %3075 = vmatprep.subr.mxu0 %v3476_v21  ;;  %3077 = vmatprep.mubr.msk.f32.mxu0 %vm3477_vm2, %v3476_v21 }
 0x14f   : > { %3076 = vmatpush3.msra.mxu0 %v561_v56  ;;  %3092 = vmatprep.mubr.msk.f32.mxu1 %vm3477_vm2, %v3476_v21  ;;  %v2780_v56 = vld [vmem:[%s4145_s3 + $0x20] sm:$0xff] }
 0x150   : > { %3101 = vmatprep.subr.mxu0 %v3476_v21 }
 0x151   : > { %3078 = vmatmul.mubr.msk.f32.vlgmr.msra.gmra.mxu0 %vm309_vm0, %v3605_v46 }
 0x152   : > { %3080 = vmatprep.mubr.msk.f32.mxu0 %vm3477_vm2, %v3476_v21 }
 0x155   : > { %3081 = vmatmul.mubr.msk.f32.gmra.mxu0 %vm309_vm0, %v3622_v53 }
 0x156   : > { %3083 = vmatprep.mubr.msk.f32.mxu0 %vm3477_vm2, %v3476_v21 }
 0x159   : > { %3084 = vmatmul.mubr.msk.f32.gmra.mxu0 %vm309_vm0, %v3636_v55 }
 0x15a   : > { %3107 = vmatprep.mubr.msk.f32.mxu0 %vm3477_vm2, %v3476_v21 }
 0x204   : > { %v460_v57 = vpop.f32.mrf.mxu0  ;;  %v547_v58 = vpop.f32.mrf.mxu1 }
 0x205   : > { %v474_v11 = vmul.f32 0.35355338, %v460_v57 }
 0x206   : > { %v3045_v59 = vpop.f32.mrf.mxu0  ;;  %v3062_v60 = vpop.f32.mrf.mxu1 }
 0x207   : > { %v2797_v59 = vld [vmem:[%s4147_s5 + $0x38] sm:$0xff]  ;;  %v2796_v60 = vld [vmem:[%s4147_s5 + $0x30] sm:$0xff] }
 0x209   : > { %v465_v61 = vpop.f32.mrf.mxu0  ;;  %v552_v62 = vpop.f32.mrf.mxu1 }
 0x20a   : > { %v475_v14 = vmul.f32 0.35355338, %v465_v61  ;;  %v2795_v61 = vld [vmem:[%s4147_s5 + $0x28] sm:$0xff] }
 0x20b   : > { %v3048_v63 = vpop.f32.mrf.mxu0  ;;  %v3065_v3 = vpop.f32.mrf.mxu1 }
 0x20c   : > { %v2790_v63 = vld [vmem:[%s4146_s4 + $0x38] sm:$0xff] }
 0x20d   : > { %v470_v4 = vpop.f32.mrf.mxu0  ;;  %v557_v5 = vpop.f32.mrf.mxu1 }
 0x20e   : > { %3087 = vmatpush3.xpose.msk.msra.mxu1 %vm645_vm3, %v557_v5  ;;  %v476_v16 = vmul.f32 0.35355338, %v470_v4  ;;  %v2789_v4 = vld [vmem:[%s4146_s4 + $0x30] sm:$0xff] }
 0x20f   : > { %v3051_v6 = vpop.f32.mrf.mxu0  ;;  %v3068_v7 = vpop.f32.mrf.mxu1  ;;  %3088 = vmatprep.subr.mxu1 %v3476_v21 }
 0x210   : > { %v2788_v6 = vld [vmem:[%s4146_s4 + $0x28] sm:$0xff] }
 0x211   : > { %v631_v8 = vpop.f32.mrf.mxu0 }
 0x212   : > { %3089 = vmatpush3.xpose.msk.msra.mxu1 %vm645_vm3, %v552_v62  ;;  %v2794_v62 = vld [vmem:[%s4147_s5 + $0x20] sm:$0xff] }
 0x213   : > { %v3079_v9 = vpop.f32.mrf.mxu0  ;;  %3090 = vmatprep.subr.mxu1 %v3476_v21 }
 0x215   : > { %v636_v10 = vpop.f32.mrf.mxu0 }
 0x216   : > { %3091 = vmatpush3.xpose.msk.msra.mxu1 %vm645_vm3, %v547_v58 }
 0x217   : > { %v3082_v12 = vpop.f32.mrf.mxu0  ;;  %3116 = vmatprep.subr.mxu1 %v3476_v21 }
 0x219   : > { %v641_v13 = vpop.f32.mrf.mxu0  ;;  %3093 = vmatmul.mubr.msk.f32.vlgmr.msra.gmra.mxu1 %vm645_vm3, %v474_v11 }
 0x21a   : > { %3102 = vmatpush3.msk.msra.mxu0 %vm788_vm4, %v641_v13  ;;  %3095 = vmatprep.mubr.msk.f32.mxu1 %vm3477_vm2, %v3476_v21 }
 0x21b   : > { %v3085_v15 = vpop.f32.mrf.mxu0  ;;  %3103 = vmatprep.subr.mxu0 %v3476_v21  ;;  %3117 = vmatpush3.msra.mxu1 %v872_v42 }
 0x21c   : > { %3104 = vmatpush3.msra.mxu0 %v636_v10  ;;  %3144 = vmatprep.subr.mxu1 %v3476_v21 }
 0x21d   : > { %3096 = vmatmul.mubr.msk.f32.gmra.mxu1 %vm645_vm3, %v475_v14  ;;  %3105 = vmatprep.subr.mxu0 %v3476_v21 }
 0x21e   : > { %3106 = vmatpush3.msra.mxu0 %v631_v8  ;;  %3098 = vmatprep.mubr.msk.f32.mxu1 %vm3477_vm2, %v3476_v21  ;;  %v2787_v8 = vld [vmem:[%s4146_s4 + $0x20] sm:$0xff] }
 0x21f   : > { %3127 = vmatprep.subr.mxu0 %v3476_v21 }
 0x221   : > { %3099 = vmatmul.mubr.msk.f32.gmra.mxu1 %vm645_vm3, %v476_v16 }
 0x222   : > { %3118 = vmatprep.mubr.msk.f32.mxu1 %vm3477_vm2, %v3476_v21 }
 0x2d9   : > { %v730_v17 = vpop.f32.mrf.mxu1 }
 0x2da   : > { %v745_v18 = vsel %vm744_vm5, %v730_v17, -inf }
 0x2db   : > { %746 = vmax.xlane.f32.xlu0 %v745_v18  ;;  %v3094_v19 = vpop.f32.mrf.mxu1 }
 0x2dd   : > { %v735_v20 = vpop.f32.mrf.mxu1 }
 0x2de   : > { %v748_v22 = vsel %vm744_vm5, %v735_v20, -inf }
 0x2df   : > { %749 = vmax.xlane.f32.xlu1 %v748_v22  ;;  %v3097_v23 = vpop.f32.mrf.mxu1 }
 0x2e1   : > { %v740_v24 = vpop.f32.mrf.mxu1 }
 0x2e2   : > { %v752_v25 = vsel %vm751_vm6, %v740_v24, -inf }
 0x2e3   : > { %753 = vmax.xlane.f32.xlu0 %v752_v25  ;;  %v3100_v26 = vpop.f32.mrf.mxu1 }
 0x364   : > { %v747_v27 = vpop.xlane.xlu0 %746 }
 0x365   : > { %v755_v28 = vsub.f32 %v730_v17, %v747_v27 }
 0x367   : > { %v758_v29 = vmul.f32 1.442695, %v755_v28 }
 0x368   : > { %v750_v30 = vpop.xlane.xlu1 %749 }
 0x369   : > { %3420 = vpow2.f32 %v758_v29  ;;  %v756_v31 = vsub.f32 %v735_v20, %v750_v30 }
 0x36b   : > { %v760_v32 = vmul.f32 1.442695, %v756_v31 }
 0x36c   : > { %v754_v33 = vpop.xlane.xlu0 %753 }
 0x36d   : > { %3422 = vpow2.f32 %v760_v32  ;;  %v757_v34 = vsub.f32 %v740_v24, %v754_v33 }
 0x36f   : > { %v762_v35 = vmul.f32 1.442695, %v757_v34 }
 0x371   : > { %3424 = vpow2.f32 %v762_v35 }
 0x376   : > { %v3421_v36 = vpop.eup %3420 }
 0x377   : > { %v764_v37 = vsel %vm744_vm5, %v3421_v36, 0.0 }
 0x378   : > { %765 = vadd.xlane.f32.xlu1 %v764_v37 }
 0x37a   : > { %v3423_v38 = vpop.eup %3422 }
 0x37b   : > { %v767_v39 = vsel %vm744_vm5, %v3423_v38, 0.0 }
 0x37c   : > { %768 = vadd.xlane.f32.xlu0 %v767_v39 }
 0x37e   : > { %v3425_v40 = vpop.eup %3424 }
 0x37f   : > { %v770_v41 = vsel %vm751_vm6, %v3425_v40, 0.0 }
 0x380   : > { %771 = vadd.xlane.f32.xlu1 %v770_v41 }
 0x401   : > { %v766_v43 = vpop.xlane.xlu1 %765 }
 0x402   : > { %3426 = vrcp.f32 %v766_v43 }
 0x405   : > { %v769_v44 = vpop.xlane.xlu0 %768 }
 0x406   : > { %3428 = vrcp.f32 %v769_v44 }
 0x409   : > { %v772_v45 = vpop.xlane.xlu1 %771 }
 0x40a   : > { %3430 = vrcp.f32 %v772_v45 }
 0x40f   : > { %v3427_v47 = vpop.eup %3426 }
 0x410   : > { %v776_v48 = vmul.f32 %v3427_v47, %v3421_v36 }
 0x412   : > { %3108 = vmatmul.mubr.msk.f32.vlgmr.msra.gmra.mxu0 %vm744_vm5, %v776_v48 }
 0x413   : > { %v3429_v51 = vpop.eup %3428  ;;  %3110 = vmatprep.mubr.msk.f32.mxu0 %vm3477_vm2, %v3476_v21  ;;  %3128 = vmatpush3.msra.mxu0 %v2783_v49 }
 0x414   : > { %v777_v52 = vmul.f32 %v3429_v51, %v3423_v38  ;;  %3129 = vmatprep.subr.mxu0 %v3476_v21 }
 0x415   : > { %3130 = vmatpush3.msra.mxu0 %v2782_v50 }
 0x416   : > { %3111 = vmatmul.mubr.msk.f32.gmra.mxu0 %vm744_vm5, %v777_v52  ;;  %3131 = vmatprep.subr.mxu0 %v3476_v21 }
 0x417   : > { %v3431_v57 = vpop.eup %3430  ;;  %3113 = vmatprep.mubr.msk.f32.mxu0 %vm3477_vm2, %v3476_v21  ;;  %3132 = vmatpush3.msra.mxu0 %v2781_v54 }
 0x418   : > { %v778_v58 = vmul.f32 %v3431_v57, %v3425_v40  ;;  %3133 = vmatprep.subr.mxu0 %v3476_v21 }
 0x419   : > { %3134 = vmatpush3.msra.mxu0 %v2780_v56 }
 0x41a   : > { %3114 = vmatmul.mubr.msk.f32.gmra.mxu0 %vm744_vm5, %v778_v58  ;;  %3161 = vmatprep.subr.mxu0 %v3476_v21 }
 0x41b   : > { %3135 = vmatprep.mubr.msk.f32.mxu0 %vm3477_vm2, %v3476_v21 }
 0x41e   : > { %3136 = vmatmul.mubr.msk.f32.vlgmr.msra.gmra.mxu0 %vm309_vm0, %v3605_v46 }
 0x41f   : > { %3138 = vmatprep.mubr.msk.f32.mxu0 %vm3477_vm2, %v3476_v21  ;;  %3162 = vmatpush3.msra.mxu0 %v2797_v59 }
 0x420   : > { %3163 = vmatprep.subr.mxu0 %v3476_v21 }
 0x421   : > { %3164 = vmatpush3.msra.mxu0 %v2796_v60 }
 0x422   : > { %3139 = vmatmul.mubr.msk.f32.gmra.mxu0 %vm309_vm0, %v3622_v53  ;;  %3165 = vmatprep.subr.mxu0 %v3476_v21 }
 0x423   : > { %3141 = vmatprep.mubr.msk.f32.mxu0 %vm3477_vm2, %v3476_v21  ;;  %3166 = vmatpush3.msra.mxu0 %v2795_v61 }
 0x424   : > { %3167 = vmatprep.subr.mxu0 %v3476_v21 }
 0x425   : > { %3168 = vmatpush3.msra.mxu0 %v2794_v62 }
 0x426   : > { %3142 = vmatmul.mubr.msk.f32.gmra.mxu0 %vm309_vm0, %v3636_v55  ;;  %3193 = vmatprep.subr.mxu0 %v3476_v21 }
 0x427   : > { %3169 = vmatprep.mubr.msk.f32.mxu0 %vm3477_vm2, %v3476_v21 }
 0x42a   : > { %3170 = vmatmul.mubr.msk.f32.vlgmr.msra.gmra.mxu0 %vm309_vm0, %v3605_v46 }
 0x42b   : > { %3172 = vmatprep.mubr.msk.f32.mxu0 %vm3477_vm2, %v3476_v21 }
 0x42e   : > { %3173 = vmatmul.mubr.msk.f32.gmra.mxu0 %vm309_vm0, %v3622_v53 }
 0x42f   : > { %3175 = vmatprep.mubr.msk.f32.mxu0 %vm3477_vm2, %v3476_v21 }
 0x432   : > { %3176 = vmatmul.mubr.msk.f32.gmra.mxu0 %vm309_vm0, %v3636_v55 }
 0x433   : > { %3199 = vmatprep.mubr.msk.f32.mxu0 %vm3477_vm2, %v3476_v21 }
 0x4d2   : > { %v858_v3 = vpop.f32.mrf.mxu0 }
 0x4d3   : > { %3119 = vmatmul.mubr.msk.f32.vlgmr.msra.gmra.mxu1 %vm645_vm3, %v858_v3 }
 0x4d4   : > { %v3109_v5 = vpop.f32.mrf.mxu0  ;;  %3145 = vmatpush3.msra.mxu1 %v2790_v63  ;;  %3121 = vmatprep.mubr.msk.f32.mxu1 %vm3477_vm2, %v3476_v21 }
 0x4d5   : > { %3146 = vmatprep.subr.mxu1 %v3476_v21 }
 0x4d6   : > { %v863_v7 = vpop.f32.mrf.mxu0  ;;  %3147 = vmatpush3.msra.mxu1 %v2789_v4 }
 0x4d7   : > { %3122 = vmatmul.mubr.msk.f32.gmra.mxu1 %vm645_vm3, %v863_v7  ;;  %3148 = vmatprep.subr.mxu1 %v3476_v21 }
 0x4d8   : > { %v3112_v9 = vpop.f32.mrf.mxu0  ;;  %3124 = vmatprep.mubr.msk.f32.mxu1 %vm3477_vm2, %v3476_v21  ;;  %3149 = vmatpush3.msra.mxu1 %v2788_v6  ;;  %v2811_v6 = vld [vmem:[%s4148_s6 + $0x8] sm:$0xff] }
 0x4d9   : > { %3150 = vmatprep.subr.mxu1 %v3476_v21 }
 0x4da   : > { %v868_v10 = vpop.f32.mrf.mxu0  ;;  %3151 = vmatpush3.msra.mxu1 %v2787_v8 }
 0x4db   : > { %3125 = vmatmul.mubr.msk.f32.gmra.mxu1 %vm645_vm3, %v868_v10  ;;  %3178 = vmatprep.subr.mxu1 %v3476_v21 }
 0x4dc   : > { %v3115_v11 = vpop.f32.mrf.mxu0  ;;  %3152 = vmatprep.mubr.msk.f32.mxu1 %vm3477_vm2, %v3476_v21 }
 0x4de   : > { %v1036_v12 = vpop.f32.mrf.mxu0 }
 0x4df   : > { %3153 = vmatmul.mubr.msk.f32.vlgmr.msra.gmra.mxu1 %vm309_vm0, %v3605_v46  ;;  %v1050_v37 = vmul.f32 0.35355338, %v1036_v12  ;;  %v2818_v12 = vld [vmem:[%s4145_s3 + $0x58] sm:$0xff] }
 0x4e0   : > { %v3137_v13 = vpop.f32.mrf.mxu0  ;;  %3155 = vmatprep.mubr.msk.f32.mxu1 %vm3477_vm2, %v3476_v21 }
 0x4e1   : > { %v2817_v13 = vld [vmem:[%s4145_s3 + $0x50] sm:$0xff] }
 0x4e2   : > { %v1041_v14 = vpop.f32.mrf.mxu0 }
 0x4e3   : > { %3156 = vmatmul.mubr.msk.f32.gmra.mxu1 %vm309_vm0, %v3622_v53  ;;  %v1051_v38 = vmul.f32 0.35355338, %v1041_v14 }
 0x4e4   : > { %v3140_v15 = vpop.f32.mrf.mxu0  ;;  %3158 = vmatprep.mubr.msk.f32.mxu1 %vm3477_vm2, %v3476_v21 }
 0x4e6   : > { %v1046_v16 = vpop.f32.mrf.mxu0 }
 0x4e7   : > { %3159 = vmatmul.mubr.msk.f32.gmra.mxu1 %vm309_vm0, %v3636_v55  ;;  %v1052_v39 = vmul.f32 0.35355338, %v1046_v16  ;;  %v2816_v16 = vld [vmem:[%s4145_s3 + $0x48] sm:$0xff] }
 0x4e8   : > { %v3143_v17 = vpop.f32.mrf.mxu0  ;;  %3184 = vmatprep.mubr.msk.f32.mxu1 %vm3477_vm2, %v3476_v21 }
 0x4e9   : > { %v2815_v17 = vld [vmem:[%s4145_s3 + $0x40] sm:$0xff] }
 0x4ea   : > { %v1209_v18 = vpop.f32.mrf.mxu0 }
 0x4ec   : > { %v3171_v19 = vpop.f32.mrf.mxu0 }
 0x4ee   : > { %v1214_v20 = vpop.f32.mrf.mxu0 }
 0x4f0   : > { %v3174_v22 = vpop.f32.mrf.mxu0 }
 0x4f1   : > { %v2831_v22 = vld [vmem:[%s4147_s5 + $0x50] sm:$0xff] }
 0x4f2   : > { %v1219_v23 = vpop.f32.mrf.mxu0 }
 0x4f3   : > { %3194 = vmatpush3.msk.msra.mxu0 %vm788_vm4, %v1219_v23  ;;  %v2830_v23 = vld [vmem:[%s4147_s5 + $0x48] sm:$0xff] }
 0x4f4   : > { %v3177_v24 = vpop.f32.mrf.mxu0  ;;  %3195 = vmatprep.subr.mxu0 %v3476_v21 }
 0x4f5   : > { %3196 = vmatpush3.msra.mxu0 %v1214_v20  ;;  %v2832_v20 = vld [vmem:[%s4147_s5 + $0x58] sm:$0xff]  ;;  %v2829_v24 = vld [vmem:[%s4147_s5 + $0x40] sm:$0xff] }
 0x4f6   : > { %3197 = vmatprep.subr.mxu0 %v3476_v21 }
 0x4f7   : > { %3198 = vmatpush3.msra.mxu0 %v1209_v18 }
 0x4f8   : > { %3219 = vmatprep.subr.mxu0 %v3476_v21 }
 0x593   : > { %v3799_v25 = vpop.f32.mrf.mxu1 }
 0x595   : > { %v3120_v26 = vpop.f32.mrf.mxu1 }
 0x596   : > { %v2825_v26 = vld [vmem:[%s4146_s4 + $0x58] sm:$0xff] }
 0x597   : > { %v3801_v27 = vpop.f32.mrf.mxu1 }
 0x599   : > { %v3123_v28 = vpop.f32.mrf.mxu1 }
 0x59b   : > { %v3803_v29 = vpop.f32.mrf.mxu1 }
 0x59d   : > { %v3126_v30 = vpop.f32.mrf.mxu1 }
 0x59e   : > { %v2824_v30 = vld [vmem:[%s4146_s4 + $0x50] sm:$0xff] }
 0x59f   : > { %v1124_v31 = vpop.f32.mrf.mxu1 }
 0x5a1   : > { %v3154_v32 = vpop.f32.mrf.mxu1 }
 0x5a2   : > { %v2823_v32 = vld [vmem:[%s4146_s4 + $0x48] sm:$0xff] }
 0x5a3   : > { %v1129_v33 = vpop.f32.mrf.mxu1 }
 0x5a5   : > { %v3157_v34 = vpop.f32.mrf.mxu1 }
 0x5a6   : > { %v2822_v34 = vld [vmem:[%s4146_s4 + $0x40] sm:$0xff] }
 0x5a7   : > { %v1134_v35 = vpop.f32.mrf.mxu1 }
 0x5a8   : > { %3179 = vmatpush3.xpose.msk.msra.mxu1 %vm645_vm3, %v1134_v35 }
 0x5a9   : > { %v3160_v36 = vpop.f32.mrf.mxu1  ;;  %3180 = vmatprep.subr.mxu1 %v3476_v21 }
 0x5ac   : > { %3181 = vmatpush3.xpose.msk.msra.mxu1 %vm645_vm3, %v1129_v33 }
 0x5ad   : > { %3182 = vmatprep.subr.mxu1 %v3476_v21 }
 0x5b0   : > { %3183 = vmatpush3.xpose.msk.msra.mxu1 %vm645_vm3, %v1124_v31 }
 0x5b1   : > { %3208 = vmatprep.subr.mxu1 %v3476_v21 }
 0x5b3   : > { %3185 = vmatmul.mubr.msk.f32.vlgmr.msra.gmra.mxu1 %vm645_vm3, %v1050_v37 }
 0x5b4   : > { %3187 = vmatprep.mubr.msk.f32.mxu1 %vm3477_vm2, %v3476_v21  ;;  %3209 = vmatpush3.msra.mxu1 %v2811_v6 }
 0x5b5   : > { %3236 = vmatprep.subr.mxu1 %v3476_v21 }
 0x5b7   : > { %3188 = vmatmul.mubr.msk.f32.gmra.mxu1 %vm645_vm3, %v1051_v38 }
 0x5b8   : > { %3190 = vmatprep.mubr.msk.f32.mxu1 %vm3477_vm2, %v3476_v21 }
 0x5bb   : > { %3191 = vmatmul.mubr.msk.f32.gmra.mxu1 %vm645_vm3, %v1052_v39 }
 0x5bc   : > { %3210 = vmatprep.mubr.msk.f32.mxu1 %vm3477_vm2, %v3476_v21 }
 0x673   : > { %v1307_v40 = vpop.f32.mrf.mxu1 }
 0x674   : > { %v1321_v41 = vsel %vm744_vm5, %v1307_v40, -inf }
 0x675   : > { %1322 = vmax.xlane.f32.xlu0 %v1321_v41  ;;  %v3186_v42 = vpop.f32.mrf.mxu1 }
 0x677   : > { %v1312_v43 = vpop.f32.mrf.mxu1 }
 0x678   : > { %v1324_v44 = vsel %vm744_vm5, %v1312_v43, -inf }
 0x679   : > { %1325 = vmax.xlane.f32.xlu1 %v1324_v44  ;;  %v3189_v45 = vpop.f32.mrf.mxu1 }
 0x67b   : > { %v1317_v47 = vpop.f32.mrf.mxu1 }
 0x67c   : > { %v1327_v48 = vsel %vm751_vm6, %v1317_v47, -inf }
 0x67d   : > { %1328 = vmax.xlane.f32.xlu0 %v1327_v48  ;;  %v3192_v49 = vpop.f32.mrf.mxu1 }
 0x6fe   : > { %v1323_v50 = vpop.xlane.xlu0 %1322 }
 0x6ff   : > { %v1330_v51 = vsub.f32 %v1307_v40, %v1323_v50 }
 0x701   : > { %v1333_v52 = vmul.f32 1.442695, %v1330_v51  ;;  %v2757_v51 = vld [vmem:[%s4149_s7] ss:$0 sm:$0xff] }
 0x702   : > { %v1326_v54 = vpop.xlane.xlu1 %1325 }
 0x703   : > { %3432 = vpow2.f32 %v1333_v52  ;;  %v1331_v56 = vsub.f32 %v1312_v43, %v1326_v54  ;;  %v378_v52 = vadd.f32 %v2757_v51, %v3539_v0 }
 0x705   : > { %v1335_v57 = vmul.f32 1.442695, %v1331_v56  ;;  %v962_v54 = vadd.f32 %v3799_v25, %v378_v52  ;;  %v379_v56 = vadd.f32 %v2757_v51, %v3543_v2 }
 0x706   : > { %v1329_v58 = vpop.xlane.xlu0 %1328 }
 0x707   : > { %3434 = vpow2.f32 %v1335_v57  ;;  %v1332_v59 = vsub.f32 %v1317_v47, %v1329_v58 }
 0x709   : > { %v1337_v60 = vmul.f32 1.442695, %v1332_v59 }
 0x70b   : > { %3436 = vpow2.f32 %v1337_v60  ;;  %v963_v60 = vadd.f32 %v3801_v27, %v379_v56  ;;  %v2867_v56 = vld [vmem:[%s4147_s5 + $0x78] sm:$0xff] }
 0x710   : > { %v3433_v61 = vpop.eup %3432 }
 0x711   : > { %v1339_v62 = vsel %vm744_vm5, %v3433_v61, 0.0 }
 0x712   : > { %1340 = vadd.xlane.f32.xlu1 %v1339_v62 }
 0x714   : > { %v3435_v63 = vpop.eup %3434 }
 0x715   : > { %v1342_v3 = vsel %vm744_vm5, %v3435_v63, 0.0 }
 0x716   : > { %1343 = vadd.xlane.f32.xlu0 %v1342_v3 }
 0x718   : > { %v3437_v4 = vpop.eup %3436 }
 0x719   : > { %v1345_v5 = vsel %vm751_vm6, %v3437_v4, 0.0 }
 0x71a   : > { %1346 = vadd.xlane.f32.xlu1 %v1345_v5 }
 0x79b   : > { %v1341_v7 = vpop.xlane.xlu1 %1340 }
 0x79c   : > { %3438 = vrcp.f32 %v1341_v7 }
 0x79f   : > { %v1344_v8 = vpop.xlane.xlu0 %1343 }
 0x7a0   : > { %3440 = vrcp.f32 %v1344_v8 }
 0x7a3   : > { %v1347_v9 = vpop.xlane.xlu1 %1346 }
 0x7a4   : > { %3442 = vrcp.f32 %v1347_v9 }
 0x7a9   : > { %v3439_v10 = vpop.eup %3438 }
 0x7aa   : > { %v1351_v11 = vmul.f32 %v3439_v10, %v3433_v61  ;;  %v380_v61 = vadd.f32 %v2757_v51, %v3541_v1  ;;  %v2850_v51 = vld [vmem:[%s4145_s3 + $0x60] sm:$0xff] }
 0x7ac   : > { %3200 = vmatmul.mubr.msk.f32.vlgmr.msra.gmra.mxu0 %vm744_vm5, %v1351_v11 }
 0x7ad   : > { %v3441_v14 = vpop.eup %3440  ;;  %3202 = vmatprep.mubr.msk.f32.mxu0 %vm3477_vm2, %v3476_v21  ;;  %3220 = vmatpush3.msra.mxu0 %v2818_v12 }
 0x7ae   : > { %v1352_v15 = vmul.f32 %v3441_v14, %v3435_v63  ;;  %3221 = vmatprep.subr.mxu0 %v3476_v21 }
 0x7af   : > { %3222 = vmatpush3.msra.mxu0 %v2817_v13 }
 0x7b0   : > { %3203 = vmatmul.mubr.msk.f32.gmra.mxu0 %vm744_vm5, %v1352_v15  ;;  %3223 = vmatprep.subr.mxu0 %v3476_v21 }
 0x7b1   : > { %v3443_v18 = vpop.eup %3442  ;;  %3205 = vmatprep.mubr.msk.f32.mxu0 %vm3477_vm2, %v3476_v21  ;;  %3224 = vmatpush3.msra.mxu0 %v2816_v16 }
 0x7b2   : > { %v1353_v19 = vmul.f32 %v3443_v18, %v3437_v4  ;;  %3225 = vmatprep.subr.mxu0 %v3476_v21  ;;  %v964_v4 = vadd.f32 %v3803_v29, %v380_v61  ;;  %v2860_v61 = vld [vmem:[%s4146_s4 + $0x78] sm:$0xff] }
 0x7b3   : > { %3226 = vmatpush3.msra.mxu0 %v2815_v17 }
 0x7b4   : > { %3206 = vmatmul.mubr.msk.f32.gmra.mxu0 %vm744_vm5, %v1353_v19  ;;  %3253 = vmatprep.subr.mxu0 %v3476_v21 }
 0x7b5   : > { %3227 = vmatprep.mubr.msk.f32.mxu0 %vm3477_vm2, %v3476_v21 }
 0x7b8   : > { %3228 = vmatmul.mubr.msk.f32.vlgmr.msra.gmra.mxu0 %vm309_vm0, %v3605_v46 }
 0x7b9   : > { %3230 = vmatprep.mubr.msk.f32.mxu0 %vm3477_vm2, %v3476_v21  ;;  %3254 = vmatpush3.msra.mxu0 %v2832_v20 }
 0x7ba   : > { %3255 = vmatprep.subr.mxu0 %v3476_v21 }
 0x7bb   : > { %3256 = vmatpush3.msra.mxu0 %v2831_v22 }
 0x7bc   : > { %3231 = vmatmul.mubr.msk.f32.gmra.mxu0 %vm309_vm0, %v3622_v53  ;;  %3257 = vmatprep.subr.mxu0 %v3476_v21 }
 0x7bd   : > { %3233 = vmatprep.mubr.msk.f32.mxu0 %vm3477_vm2, %v3476_v21  ;;  %3258 = vmatpush3.msra.mxu0 %v2830_v23 }
 0x7be   : > { %3259 = vmatprep.subr.mxu0 %v3476_v21 }
 0x7bf   : > { %3260 = vmatpush3.msra.mxu0 %v2829_v24 }
 0x7c0   : > { %3234 = vmatmul.mubr.msk.f32.gmra.mxu0 %vm309_vm0, %v3636_v55  ;;  %3285 = vmatprep.subr.mxu0 %v3476_v21 }
 0x7c1   : > { %3261 = vmatprep.mubr.msk.f32.mxu0 %vm3477_vm2, %v3476_v21 }
 0x7c4   : > { %3262 = vmatmul.mubr.msk.f32.vlgmr.msra.gmra.mxu0 %vm309_vm0, %v3605_v46 }
 0x7c5   : > { %3264 = vmatprep.mubr.msk.f32.mxu0 %vm3477_vm2, %v3476_v21 }
 0x7c8   : > { %3265 = vmatmul.mubr.msk.f32.gmra.mxu0 %vm309_vm0, %v3622_v53 }
 0x7c9   : > { %3267 = vmatprep.mubr.msk.f32.mxu0 %vm3477_vm2, %v3476_v21 }
 0x7cc   : > { %3268 = vmatmul.mubr.msk.f32.gmra.mxu0 %vm309_vm0, %v3636_v55 }
 0x7cd   : > { %3291 = vmatprep.mubr.msk.f32.mxu0 %vm3477_vm2, %v3476_v21 }
 0x86c   : > { %v1432_v28 = vpop.f32.mrf.mxu0 }
 0x86d   : > { %3211 = vmatmul.mubr.msk.f32.vlgmr.msra.gmra.mxu1 %vm645_vm3, %v1432_v28 }
 0x86e   : > { %v3201_v31 = vpop.f32.mrf.mxu0  ;;  %3237 = vmatpush3.msra.mxu1 %v2825_v26  ;;  %3213 = vmatprep.mubr.msk.f32.mxu1 %vm3477_vm2, %v3476_v21 }
 0x86f   : > { %3238 = vmatprep.subr.mxu1 %v3476_v21 }
 0x870   : > { %v1437_v33 = vpop.f32.mrf.mxu0  ;;  %3239 = vmatpush3.msra.mxu1 %v2824_v30 }
 0x871   : > { %3214 = vmatmul.mubr.msk.f32.gmra.mxu1 %vm645_vm3, %v1437_v33  ;;  %3240 = vmatprep.subr.mxu1 %v3476_v21 }
 0x872   : > { %v3204_v35 = vpop.f32.mrf.mxu0  ;;  %3216 = vmatprep.mubr.msk.f32.mxu1 %vm3477_vm2, %v3476_v21  ;;  %3241 = vmatpush3.msra.mxu1 %v2823_v32 }
 0x873   : > { %3242 = vmatprep.subr.mxu1 %v3476_v21 }
 0x874   : > { %v1442_v36 = vpop.f32.mrf.mxu0  ;;  %3243 = vmatpush3.msra.mxu1 %v2822_v34 }
 0x875   : > { %3217 = vmatmul.mubr.msk.f32.gmra.mxu1 %vm645_vm3, %v1442_v36  ;;  %3270 = vmatprep.subr.mxu1 %v3476_v21 }
 0x876   : > { %v3207_v37 = vpop.f32.mrf.mxu0  ;;  %3244 = vmatprep.mubr.msk.f32.mxu1 %vm3477_vm2, %v3476_v21 }
 0x878   : > { %v1611_v38 = vpop.f32.mrf.mxu0 }
 0x879   : > { %3245 = vmatmul.mubr.msk.f32.vlgmr.msra.gmra.mxu1 %vm309_vm0, %v3605_v46  ;;  %v1625_v1 = vmul.f32 0.35355338, %v1611_v38 }
 0x87a   : > { %v3229_v39 = vpop.f32.mrf.mxu0  ;;  %3247 = vmatprep.mubr.msk.f32.mxu1 %vm3477_vm2, %v3476_v21 }
 0x87b   : > { %v2846_v39 = vld [vmem:[%s4148_s6 + $0x10] sm:$0xff] }
 0x87c   : > { %v1616_v40 = vpop.f32.mrf.mxu0 }
 0x87d   : > { %3248 = vmatmul.mubr.msk.f32.gmra.mxu1 %vm309_vm0, %v3622_v53  ;;  %v1626_v29 = vmul.f32 0.35355338, %v1616_v40 }
 0x87e   : > { %v3232_v41 = vpop.f32.mrf.mxu0  ;;  %3250 = vmatprep.mubr.msk.f32.mxu1 %vm3477_vm2, %v3476_v21 }
 0x880   : > { %v1621_v42 = vpop.f32.mrf.mxu0 }
 0x881   : > { %3251 = vmatmul.mubr.msk.f32.gmra.mxu1 %vm309_vm0, %v3636_v55  ;;  %v1627_v10 = vmul.f32 0.35355338, %v1621_v42 }
 0x882   : > { %v3235_v43 = vpop.f32.mrf.mxu0  ;;  %3276 = vmatprep.mubr.msk.f32.mxu1 %vm3477_vm2, %v3476_v21 }
 0x884   : > { %v1784_v44 = vpop.f32.mrf.mxu0 }
 0x886   : > { %v3263_v45 = vpop.f32.mrf.mxu0 }
 0x887   : > { %v2853_v45 = vld [vmem:[%s4145_s3 + $0x78] sm:$0xff] }
 0x888   : > { %v1789_v47 = vpop.f32.mrf.mxu0 }
 0x88a   : > { %v3266_v48 = vpop.f32.mrf.mxu0 }
 0x88c   : > { %v1794_v49 = vpop.f32.mrf.mxu0 }
 0x88d   : > { %3286 = vmatpush3.msk.msra.mxu0 %vm788_vm4, %v1794_v49 }
 0x88e   : > { %v3269_v50 = vpop.f32.mrf.mxu0  ;;  %3287 = vmatprep.subr.mxu0 %v3476_v21 }
 0x88f   : > { %3288 = vmatpush3.msra.mxu0 %v1789_v47  ;;  %v2852_v47 = vld [vmem:[%s4145_s3 + $0x70] sm:$0xff]  ;;  %v2851_v50 = vld [vmem:[%s4145_s3 + $0x68] sm:$0xff] }
 0x890   : > { %3289 = vmatprep.subr.mxu0 %v3476_v21 }
 0x891   : > { %3290 = vmatpush3.msra.mxu0 %v1784_v44 }
 0x892   : > { %3311 = vmatprep.subr.mxu0 %v3476_v21 }
 0x92d   : > { %v1523_v57 = vpop.f32.mrf.mxu1 }
 0x92e   : > { %v3942_v58 = vadd.f32 %v1523_v57, %v962_v54  ;;  %v2866_v57 = vld [vmem:[%s4147_s5 + $0x70] sm:$0xff] }
 0x92f   : > { %v3212_v59 = vpop.f32.mrf.mxu1 }
 0x930   : > { %v2865_v59 = vld [vmem:[%s4147_s5 + $0x68] sm:$0xff] }
 0x931   : > { %v1528_v62 = vpop.f32.mrf.mxu1 }
 0x932   : > { %v3946_v63 = vadd.f32 %v1528_v62, %v963_v60  ;;  %v2864_v60 = vld [vmem:[%s4147_s5 + $0x60] sm:$0xff] }
 0x933   : > { %v3215_v3 = vpop.f32.mrf.mxu1 }
 0x934   : > { %v2859_v3 = vld [vmem:[%s4146_s4 + $0x70] sm:$0xff] }
 0x935   : > { %v1533_v5 = vpop.f32.mrf.mxu1 }
 0x936   : > { %v3949_v0 = vadd.f32 %v1533_v5, %v964_v4  ;;  %v2858_v5 = vld [vmem:[%s4146_s4 + $0x68] sm:$0xff] }
 0x937   : > { %v3218_v25 = vpop.f32.mrf.mxu1 }
 0x939   : > { %v1699_v6 = vpop.f32.mrf.mxu1 }
 0x93b   : > { %v3246_v2 = vpop.f32.mrf.mxu1 }
 0x93d   : > { %v1704_v7 = vpop.f32.mrf.mxu1 }
 0x93f   : > { %v3249_v8 = vpop.f32.mrf.mxu1 }
 0x941   : > { %v1709_v9 = vpop.f32.mrf.mxu1 }
 0x942   : > { %3271 = vmatpush3.xpose.msk.msra.mxu1 %vm645_vm3, %v1709_v9 }
 0x943   : > { %v3252_v27 = vpop.f32.mrf.mxu1  ;;  %3272 = vmatprep.subr.mxu1 %v3476_v21 }
 0x946   : > { %3273 = vmatpush3.xpose.msk.msra.mxu1 %vm645_vm3, %v1704_v7 }
 0x947   : > { %3274 = vmatprep.subr.mxu1 %v3476_v21 }
 0x94a   : > { %3275 = vmatpush3.xpose.msk.msra.mxu1 %vm645_vm3, %v1699_v6  ;;  %v2857_v6 = vld [vmem:[%s4146_s4 + $0x60] sm:$0xff] }
 0x94b   : > { %3300 = vmatprep.subr.mxu1 %v3476_v21 }
 0x94d   : > { %3277 = vmatmul.mubr.msk.f32.vlgmr.msra.gmra.mxu1 %vm645_vm3, %v1625_v1 }
 0x94e   : > { %3279 = vmatprep.mubr.msk.f32.mxu1 %vm3477_vm2, %v3476_v21  ;;  %3301 = vmatpush3.msra.mxu1 %v2846_v39 }
 0x94f   : > { %3328 = vmatprep.subr.mxu1 %v3476_v21 }
 0x951   : > { %3280 = vmatmul.mubr.msk.f32.gmra.mxu1 %vm645_vm3, %v1626_v29 }
 0x952   : > { %3282 = vmatprep.mubr.msk.f32.mxu1 %vm3477_vm2, %v3476_v21 }
 0x955   : > { %3283 = vmatmul.mubr.msk.f32.gmra.mxu1 %vm645_vm3, %v1627_v10 }
 0x956   : > { %3302 = vmatprep.mubr.msk.f32.mxu1 %vm3477_vm2, %v3476_v21 }
 0xa0d   : > { %v1882_v11 = vpop.f32.mrf.mxu1 }
 0xa0e   : > { %v1896_v12 = vsel %vm744_vm5, %v1882_v11, -inf }
 0xa0f   : > { %1897 = vmax.xlane.f32.xlu0 %v1896_v12  ;;  %v3278_v13 = vpop.f32.mrf.mxu1 }
 0xa11   : > { %v1887_v14 = vpop.f32.mrf.mxu1 }
 0xa12   : > { %v1899_v15 = vsel %vm744_vm5, %v1887_v14, -inf }
 0xa13   : > { %1900 = vmax.xlane.f32.xlu1 %v1899_v15  ;;  %v3281_v16 = vpop.f32.mrf.mxu1 }
 0xa15   : > { %v1892_v17 = vpop.f32.mrf.mxu1 }
 0xa16   : > { %v1902_v18 = vsel %vm751_vm6, %v1892_v17, -inf }
 0xa17   : > { %1903 = vmax.xlane.f32.xlu0 %v1902_v18  ;;  %v3284_v19 = vpop.f32.mrf.mxu1 }
 0xa98   : > { %v1898_v20 = vpop.xlane.xlu0 %1897 }
 0xa99   : > { %v1905_v22 = vsub.f32 %v1882_v11, %v1898_v20 }
 0xa9b   : > { %v1908_v23 = vmul.f32 1.442695, %v1905_v22 }
 0xa9c   : > { %v1901_v24 = vpop.xlane.xlu1 %1900 }
 0xa9d   : > { %3444 = vpow2.f32 %v1908_v23  ;;  %v1906_v26 = vsub.f32 %v1887_v14, %v1901_v24 }
 0xa9f   : > { %v1910_v28 = vmul.f32 1.442695, %v1906_v26 }
 0xaa0   : > { %v1904_v30 = vpop.xlane.xlu0 %1903 }
 0xaa1   : > { %3446 = vpow2.f32 %v1910_v28  ;;  %v1907_v31 = vsub.f32 %v1892_v17, %v1904_v30 }
 0xaa3   : > { %v1912_v32 = vmul.f32 1.442695, %v1907_v31 }
 0xaa5   : > { %3448 = vpow2.f32 %v1912_v32 }
 0xaaa   : > { %v3445_v33 = vpop.eup %3444 }
 0xaab   : > { %v1914_v34 = vsel %vm744_vm5, %v3445_v33, 0.0 }
 0xaac   : > { %1915 = vadd.xlane.f32.xlu1 %v1914_v34 }
 0xaae   : > { %v3447_v35 = vpop.eup %3446 }
 0xaaf   : > { %v1917_v36 = vsel %vm744_vm5, %v3447_v35, 0.0 }
 0xab0   : > { %1918 = vadd.xlane.f32.xlu0 %v1917_v36 }
 0xab2   : > { %v3449_v37 = vpop.eup %3448 }
 0xab3   : > { %v1920_v38 = vsel %vm751_vm6, %v3449_v37, 0.0 }
 0xab4   : > { %1921 = vadd.xlane.f32.xlu1 %v1920_v38 }
 0xb35   : > { %v1916_v40 = vpop.xlane.xlu1 %1915 }
 0xb36   : > { %3450 = vrcp.f32 %v1916_v40 }
 0xb39   : > { %v1919_v41 = vpop.xlane.xlu0 %1918 }
 0xb3a   : > { %3452 = vrcp.f32 %v1919_v41 }
 0xb3d   : > { %v1922_v42 = vpop.xlane.xlu1 %1921 }
 0xb3e   : > { %3454 = vrcp.f32 %v1922_v42 }
 0xb43   : > { %v3451_v43 = vpop.eup %3450 }
 0xb44   : > { %v1926_v44 = vmul.f32 %v3451_v43, %v3445_v33 }
 0xb46   : > { %3292 = vmatmul.mubr.msk.f32.vlgmr.msra.gmra.mxu0 %vm744_vm5, %v1926_v44 }
 0xb47   : > { %v3453_v48 = vpop.eup %3452  ;;  %3294 = vmatprep.mubr.msk.f32.mxu0 %vm3477_vm2, %v3476_v21  ;;  %3312 = vmatpush3.msra.mxu0 %v2853_v45 }
 0xb48   : > { %v1927_v49 = vmul.f32 %v3453_v48, %v3447_v35  ;;  %3313 = vmatprep.subr.mxu0 %v3476_v21 }
 0xb49   : > { %3314 = vmatpush3.msra.mxu0 %v2852_v47 }
 0xb4a   : > { %3295 = vmatmul.mubr.msk.f32.gmra.mxu0 %vm744_vm5, %v1927_v49  ;;  %3315 = vmatprep.subr.mxu0 %v3476_v21 }
 0xb4b   : > { %v3455_v52 = vpop.eup %3454  ;;  %3297 = vmatprep.mubr.msk.f32.mxu0 %vm3477_vm2, %v3476_v21  ;;  %3316 = vmatpush3.msra.mxu0 %v2851_v50 }
 0xb4c   : > { %v1928_v54 = vmul.f32 %v3455_v52, %v3449_v37  ;;  %3317 = vmatprep.subr.mxu0 %v3476_v21 }
 0xb4d   : > { %3318 = vmatpush3.msra.mxu0 %v2850_v51 }
 0xb4e   : > { %3298 = vmatmul.mubr.msk.f32.gmra.mxu0 %vm744_vm5, %v1928_v54  ;;  %3345 = vmatprep.subr.mxu0 %v3476_v21 }
 0xb4f   : > { %3319 = vmatprep.mubr.msk.f32.mxu0 %vm3477_vm2, %v3476_v21 }
 0xb52   : > { %3320 = vmatmul.mubr.msk.f32.vlgmr.msra.gmra.mxu0 %vm309_vm0, %v3605_v46 }
 0xb53   : > { %3322 = vmatprep.mubr.msk.f32.mxu0 %vm3477_vm2, %v3476_v21  ;;  %3346 = vmatpush3.msra.mxu0 %v2867_v56 }
 0xb54   : > { %3347 = vmatprep.subr.mxu0 %v3476_v21 }
 0xb55   : > { %3348 = vmatpush3.msra.mxu0 %v2866_v57 }
 0xb56   : > { %3323 = vmatmul.mubr.msk.f32.gmra.mxu0 %vm309_vm0, %v3622_v53  ;;  %3349 = vmatprep.subr.mxu0 %v3476_v21 }
 0xb57   : > { %3325 = vmatprep.mubr.msk.f32.mxu0 %vm3477_vm2, %v3476_v21  ;;  %3350 = vmatpush3.msra.mxu0 %v2865_v59 }
 0xb58   : > { %3351 = vmatprep.subr.mxu0 %v3476_v21 }
 0xb59   : > { %3352 = vmatpush3.msra.mxu0 %v2864_v60 }
 0xb5a   : > { %3326 = vmatmul.mubr.msk.f32.gmra.mxu0 %vm309_vm0, %v3636_v55  ;;  %3377 = vmatprep.subr.mxu0 %v3476_v21 }
 0xb5b   : > { %3353 = vmatprep.mubr.msk.f32.mxu0 %vm3477_vm2, %v3476_v21 }
 0xb5e   : > { %3354 = vmatmul.mubr.msk.f32.vlgmr.msra.gmra.mxu0 %vm309_vm0, %v3605_v46 }
 0xb5f   : > { %3356 = vmatprep.mubr.msk.f32.mxu0 %vm3477_vm2, %v3476_v21 }
 0xb62   : > { %3357 = vmatmul.mubr.msk.f32.gmra.mxu0 %vm309_vm0, %v3622_v53 }
 0xb63   : > { %3359 = vmatprep.mubr.msk.f32.mxu0 %vm3477_vm2, %v3476_v21 }
 0xb66   : > { %3360 = vmatmul.mubr.msk.f32.gmra.mxu0 %vm309_vm0, %v3636_v55 }
 0xb67   : > { %3383 = vmatprep.mubr.msk.f32.mxu0 %vm3477_vm2, %v3476_v21 }
 0xc06   : > { %v2007_v62 = vpop.f32.mrf.mxu0 }
 0xc07   : > { %3303 = vmatmul.mubr.msk.f32.vlgmr.msra.gmra.mxu1 %vm645_vm3, %v2007_v62  ;;  %v2881_v62 = vld [vmem:[%s4148_s6 + $0x18] sm:$0xff] }
 0xc08   : > { %v3293_v4 = vpop.f32.mrf.mxu0  ;;  %3329 = vmatpush3.msra.mxu1 %v2860_v61  ;;  %3305 = vmatprep.mubr.msk.f32.mxu1 %vm3477_vm2, %v3476_v21 }
 0xc09   : > { %3330 = vmatprep.subr.mxu1 %v3476_v21 }
 0xc0a   : > { %v2012_v25 = vpop.f32.mrf.mxu0  ;;  %3331 = vmatpush3.msra.mxu1 %v2859_v3 }
 0xc0b   : > { %3306 = vmatmul.mubr.msk.f32.gmra.mxu1 %vm645_vm3, %v2012_v25  ;;  %3332 = vmatprep.subr.mxu1 %v3476_v21 }
 0xc0c   : > { %v3296_v2 = vpop.f32.mrf.mxu0  ;;  %3308 = vmatprep.mubr.msk.f32.mxu1 %vm3477_vm2, %v3476_v21  ;;  %3333 = vmatpush3.msra.mxu1 %v2858_v5 }
 0xc0d   : > { %3334 = vmatprep.subr.mxu1 %v3476_v21 }
 0xc0e   : > { %v2017_v7 = vpop.f32.mrf.mxu0  ;;  %3335 = vmatpush3.msra.mxu1 %v2857_v6 }
 0xc0f   : > { %3309 = vmatmul.mubr.msk.f32.gmra.mxu1 %vm645_vm3, %v2017_v7  ;;  %3362 = vmatprep.subr.mxu1 %v3476_v21 }
 0xc10   : > { %v3299_v8 = vpop.f32.mrf.mxu0  ;;  %3336 = vmatprep.mubr.msk.f32.mxu1 %vm3477_vm2, %v3476_v21 }
 0xc12   : > { %v2186_v9 = vpop.f32.mrf.mxu0 }
 0xc13   : > { %3337 = vmatmul.mubr.msk.f32.vlgmr.msra.gmra.mxu1 %vm309_vm0, %v3605_v46 }
 0xc14   : > { %v3321_v27 = vpop.f32.mrf.mxu0  ;;  %3339 = vmatprep.mubr.msk.f32.mxu1 %vm3477_vm2, %v3476_v21 }
 0xc16   : > { %v2191_v1 = vpop.f32.mrf.mxu0 }
 0xc17   : > { %3340 = vmatmul.mubr.msk.f32.gmra.mxu1 %vm309_vm0, %v3622_v53 }
 0xc18   : > { %v3324_v29 = vpop.f32.mrf.mxu0  ;;  %3342 = vmatprep.mubr.msk.f32.mxu1 %vm3477_vm2, %v3476_v21 }
 0xc1a   : > { %v2196_v10 = vpop.f32.mrf.mxu0 }
 0xc1b   : > { %3343 = vmatmul.mubr.msk.f32.gmra.mxu1 %vm309_vm0, %v3636_v55  ;;  %v2202_v33 = vmul.f32 0.35355338, %v2196_v10 }
 0xc1c   : > { %v3327_v11 = vpop.f32.mrf.mxu0  ;;  %3368 = vmatprep.mubr.msk.f32.mxu1 %vm3477_vm2, %v3476_v21 }
 0xc1e   : > { %v2359_v46 = vpop.f32.mrf.mxu0 }
 0xc20   : > { %v3355_v12 = vpop.f32.mrf.mxu0 }
 0xc22   : > { %v2364_v13 = vpop.f32.mrf.mxu0 }
 0xc24   : > { %v3358_v14 = vpop.f32.mrf.mxu0 }
 0xc26   : > { %v2369_v15 = vpop.f32.mrf.mxu0 }
 0xc27   : > { %3378 = vmatpush3.msk.msra.mxu0 %vm788_vm4, %v2369_v15 }
 0xc28   : > { %v3361_v53 = vpop.f32.mrf.mxu0  ;;  %3379 = vmatprep.subr.mxu0 %v3476_v21 }
 0xc29   : > { %3380 = vmatpush3.msra.mxu0 %v2364_v13 }
 0xc2a   : > { %3381 = vmatprep.subr.mxu0 %v3476_v21 }
 0xc2b   : > { %3382 = vmatpush3.msra.mxu0 %v2359_v46 }
 0xcc7   : > { %v2098_v16 = vpop.f32.mrf.mxu1 }
 0xcc8   : > { %v4082_v55 = vadd.f32 %v2098_v16, %v3942_v58 }
 0xcc9   : > { %v3304_v17 = vpop.f32.mrf.mxu1 }
 0xccb   : > { %v2103_v18 = vpop.f32.mrf.mxu1 }
 0xccc   : > { %v4085_v19 = vadd.f32 %v2103_v18, %v3946_v63  ;;  %v2200_v63 = vmul.f32 0.35355338, %v2186_v9 }
 0xccd   : > { %v3307_v20 = vpop.f32.mrf.mxu1 }
 0xccf   : > { %v2108_v22 = vpop.f32.mrf.mxu1 }
 0xcd0   : > { %v4088_v23 = vadd.f32 %v2108_v22, %v3949_v0  ;;  %v2201_v0 = vmul.f32 0.35355338, %v2191_v1 }
 0xcd1   : > { %v3310_v24 = vpop.f32.mrf.mxu1 }
 0xcd3   : > { %v2274_v26 = vpop.f32.mrf.mxu1 }
 0xcd5   : > { %v3338_v28 = vpop.f32.mrf.mxu1 }
 0xcd7   : > { %v2279_v30 = vpop.f32.mrf.mxu1 }
 0xcd9   : > { %v3341_v31 = vpop.f32.mrf.mxu1 }
 0xcdb   : > { %v2284_v32 = vpop.f32.mrf.mxu1 }
 0xcdc   : > { %3363 = vmatpush3.xpose.msk.msra.mxu1 %vm645_vm3, %v2284_v32 }
 0xcdd   : > { %v3344_v58 = vpop.f32.mrf.mxu1  ;;  %3364 = vmatprep.subr.mxu1 %v3476_v21 }
 0xce0   : > { %3365 = vmatpush3.xpose.msk.msra.mxu1 %vm645_vm3, %v2279_v30 }
 0xce1   : > { %3366 = vmatprep.subr.mxu1 %v3476_v21 }
 0xce4   : > { %3367 = vmatpush3.xpose.msk.msra.mxu1 %vm645_vm3, %v2274_v26 }
 0xce5   : > { %3392 = vmatprep.subr.mxu1 %v3476_v21 }
 0xce7   : > { %3369 = vmatmul.mubr.msk.f32.vlgmr.msra.gmra.mxu1 %vm645_vm3, %v2200_v63 }
 0xce8   : > { %3371 = vmatprep.mubr.msk.f32.mxu1 %vm3477_vm2, %v3476_v21  ;;  %3393 = vmatpush3.msra.mxu1 %v2881_v62 }
 0xceb   : > { %3372 = vmatmul.mubr.msk.f32.gmra.mxu1 %vm645_vm3, %v2201_v0 }
 0xcec   : > { %3374 = vmatprep.mubr.msk.f32.mxu1 %vm3477_vm2, %v3476_v21 }
 0xcef   : > { %3375 = vmatmul.mubr.msk.f32.gmra.mxu1 %vm645_vm3, %v2202_v33 }
 0xcf0   : > { %3394 = vmatprep.mubr.msk.f32.mxu1 %vm3477_vm2, %v3476_v21 }
 0xda7   : > { %v2457_v34 = vpop.f32.mrf.mxu1 }
 0xda8   : > { %v2471_v35 = vsel %vm744_vm5, %v2457_v34, -inf }
 0xda9   : > { %2472 = vmax.xlane.f32.xlu0 %v2471_v35  ;;  %v3370_v36 = vpop.f32.mrf.mxu1 }
 0xdab   : > { %v2462_v37 = vpop.f32.mrf.mxu1 }
 0xdac   : > { %v2474_v38 = vsel %vm744_vm5, %v2462_v37, -inf }
 0xdad   : > { %2475 = vmax.xlane.f32.xlu1 %v2474_v38  ;;  %v3373_v39 = vpop.f32.mrf.mxu1 }
 0xdaf   : > { %v2467_v40 = vpop.f32.mrf.mxu1 }
 0xdb0   : > { %v2477_v41 = vsel %vm751_vm6, %v2467_v40, -inf }
 0xdb1   : > { %2478 = vmax.xlane.f32.xlu0 %v2477_v41  ;;  %v3376_v42 = vpop.f32.mrf.mxu1 }
 0xe32   : > { %v2473_v43 = vpop.xlane.xlu0 %2472 }
 0xe33   : > { %v2480_v44 = vsub.f32 %v2457_v34, %v2473_v43 }
 0xe35   : > { %v2483_v45 = vmul.f32 1.442695, %v2480_v44 }
 0xe36   : > { %v2476_v47 = vpop.xlane.xlu1 %2475 }
 0xe37   : > { %3456 = vpow2.f32 %v2483_v45  ;;  %v2481_v48 = vsub.f32 %v2462_v37, %v2476_v47 }
 0xe39   : > { %v2485_v49 = vmul.f32 1.442695, %v2481_v48 }
 0xe3a   : > { %v2479_v50 = vpop.xlane.xlu0 %2478 }
 0xe3b   : > { %3458 = vpow2.f32 %v2485_v49  ;;  %v2482_v51 = vsub.f32 %v2467_v40, %v2479_v50 }
 0xe3d   : > { %v2487_v52 = vmul.f32 1.442695, %v2482_v51 }
 0xe3f   : > { %3460 = vpow2.f32 %v2487_v52 }
 0xe44   : > { %v3457_v54 = vpop.eup %3456 }
 0xe45   : > { %v2489_v56 = vsel %vm744_vm5, %v3457_v54, 0.0 }
 0xe46   : > { %2490 = vadd.xlane.f32.xlu1 %v2489_v56 }
 0xe48   : > { %v3459_v57 = vpop.eup %3458 }
 0xe49   : > { %v2492_v59 = vsel %vm744_vm5, %v3459_v57, 0.0 }
 0xe4a   : > { %2493 = vadd.xlane.f32.xlu0 %v2492_v59 }
 0xe4c   : > { %v3461_v60 = vpop.eup %3460 }
 0xe4d   : > { %v2495_v61 = vsel %vm751_vm6, %v3461_v60, 0.0 }
 0xe4e   : > { %2496 = vadd.xlane.f32.xlu1 %v2495_v61 }
 0xecf   : > { %v2491_v3 = vpop.xlane.xlu1 %2490 }
 0xed0   : > { %3462 = vrcp.f32 %v2491_v3 }
 0xed3   : > { %v2494_v4 = vpop.xlane.xlu0 %2493 }
 0xed4   : > { %3464 = vrcp.f32 %v2494_v4 }
 0xed7   : > { %v2497_v5 = vpop.xlane.xlu1 %2496 }
 0xed8   : > { %3466 = vrcp.f32 %v2497_v5 }
 0xedd   : > { %v3463_v25 = vpop.eup %3462 }
 0xede   : > { %v2501_v6 = vmul.f32 %v3463_v25, %v3457_v54 }
 0xee0   : > { %3384 = vmatmul.mubr.msk.f32.vlgmr.msra.gmra.mxu0 %vm744_vm5, %v2501_v6 }
 0xee1   : > { %v3465_v2 = vpop.eup %3464  ;;  %3386 = vmatprep.mubr.msk.f32.mxu0 %vm3477_vm2, %v3476_v21 }
 0xee2   : > { %v2502_v7 = vmul.f32 %v3465_v2, %v3459_v57 }
 0xee4   : > { %3387 = vmatmul.mubr.msk.f32.gmra.mxu0 %vm744_vm5, %v2502_v7 }
 0xee5   : > { %v3467_v8 = vpop.eup %3466  ;;  %3389 = vmatprep.mubr.msk.f32.mxu0 %vm3477_vm2, %v3476_v21 }
 0xee6   : > { %v2503_v9 = vmul.f32 %v3467_v8, %v3461_v60 }
 0xee8   : > { %3390 = vmatmul.mubr.msk.f32.gmra.mxu0 %vm744_vm5, %v2503_v9 }
 0xfa0   : > { %v2582_v27 = vpop.f32.mrf.mxu0 }
 0xfa1   : > { %3395 = vmatmul.mubr.msk.f32.vlgmr.msra.gmra.mxu1 %vm645_vm3, %v2582_v27 }
 0xfa2   : > { %v3385_v1 = vpop.f32.mrf.mxu0  ;;  %3397 = vmatprep.mubr.msk.f32.mxu1 %vm3477_vm2, %v3476_v21 }
 0xfa4   : > { %v2587_v29 = vpop.f32.mrf.mxu0 }
 0xfa5   : > { %3398 = vmatmul.mubr.msk.f32.gmra.mxu1 %vm645_vm3, %v2587_v29 }
 0xfa6   : > { %v3388_v10 = vpop.f32.mrf.mxu0  ;;  %3400 = vmatprep.mubr.msk.f32.mxu1 %vm3477_vm2, %v3476_v21 }
 0xfa8   : > { %v2592_v11 = vpop.f32.mrf.mxu0 }
 0xfa9   : > { %3401 = vmatmul.mubr.msk.f32.gmra.mxu1 %vm645_vm3, %v2592_v11 }
 0xfaa   : > { %v3391_v46 = vpop.f32.mrf.mxu0 }
0x1061   : > { %v2673_v12 = vpop.f32.mrf.mxu1 }
0x1062   : > { %v2687_v13 = vadd.f32 %v2673_v12, %v4082_v55 }
0x1063   : > { %v3396_v14 = vpop.f32.mrf.mxu1 }
0x1064   : > { %2690 = vst.msk [vmem:[%s305_s9] sm:$0xff] %vm309_vm0, %v2687_v13 }
0x1065   : > { %v2678_v15 = vpop.f32.mrf.mxu1 }
0x1066   : > { %v2688_v53 = vadd.f32 %v2678_v15, %v4085_v19 }
0x1067   : > { %v3399_v16 = vpop.f32.mrf.mxu1 }
0x1068   : > { %2691 = vst.msk [vmem:[%s305_s9 + $0x8] sm:$0xff] %vm309_vm0, %v2688_v53 }
0x1069   : > { %v2683_v21 = vpop.f32.mrf.mxu1 }
0x106a   : > { %v2689_v17 = vadd.f32 %v2683_v21, %v4088_v23 }
0x106b   : > { %v3402_v18 = vpop.f32.mrf.mxu1 }
0x106c   : > { %2692 = vst.msk [vmem:[%s305_s9 + $0x10] sm:$0x1] %vm316_vm1, %v2689_v17 }
0x106d PF: > { %s18_s27 = sadd.s32 1, %s3474_s27  }
0x106e   : > { %p15_p4 = scmp.ge.s32.totalorder %s18_s27, 4  }
0x1070   :  { %17 = sbr.rel (!%p15_p4) target bundleno = 1 (0x1), region = 94 }

</bundles_post_ra>
